<compile_context>
chip_gen: v5e
topology: v5e:2x2
jax: 0.10.0
libtpu: 0.0.40
codegen_flags: <defaults>
</compile_context>

<pallas_src>
import jax
import jax.numpy as jnp
from jax import lax
from jax.experimental import pallas as pl
from jax.experimental.pallas import tpu as pltpu

BN_EPS = 1e-5
LANE = 128


def _round_up(v, m):
    return ((v + m - 1) // m) * m


# --------------------------------------------------------------------------
# Per-generation VMEM budget and row-block selection
# --------------------------------------------------------------------------
def _vmem_limit_bytes():
    """Scoped-VMEM budget: ~40 MiB on v7x (64 MiB/TC), ~80 MiB on v5e/v6e."""
    phys = 0
    try:
        phys = int(pltpu.get_tpu_info().vmem_capacity_bytes)
    except Exception:
        phys = 0
    if not phys:
        try:
            kind = jax.devices()[0].device_kind.lower()
            phys = (64 << 20) if "v7" in kind else (128 << 20)
        except Exception:
            phys = 64 << 20
    return min(phys * 5 // 8, 100 << 20)


def _estimate_vmem(th, w2, in_lanes, k, out_lanes):
    """Rough per-grid-step VMEM use (double-buffered I/O + kernel temporaries)."""
    w2p = w2 + 2
    m = th * w2
    in_bytes = (th + 2) * w2p * in_lanes * 2          # main + 2 halo rows, bf16
    w_bytes = k * out_lanes * 2                        # im2col weights, bf16
    out_bytes = m * out_lanes * 2                      # bf16 activation tile
    stats_bytes = 2 * out_lanes * 4
    pipelined = 2 * (in_bytes + w_bytes + out_bytes + stats_bytes)
    temps = (m * k * 2                                 # im2col patches (bf16)
             + m * out_lanes * 4                       # f32 matmul result
             + (th + 2) * w2p * in_lanes * 2)          # padded column buffer
    return pipelined + temps


def _pick_tiling(h2, w2, in_lanes, k, out_lanes, vmem_limit):
    """Pick (row_block, row_groups, blocks_per_group)."""
    budget = int(vmem_limit * 0.8)
    divs = [d for d in range(1, h2 + 1) if h2 % d == 0]
    fitting = [d for d in divs
               if _estimate_vmem(d, w2, in_lanes, k, out_lanes) <= budget]
    if not fitting:
        th = 1
    else:
        capped = [d for d in fitting if d * w2 <= 8192]
        th = max(capped) if capped else min(fitting)
    nrb = h2 // th
    groups = 2 if nrb % 2 == 0 else 1   # second "parallel" axis for v7x's 2 TCs
    return th, groups, nrb // groups


# --------------------------------------------------------------------------
# Kernels
# --------------------------------------------------------------------------
def _conv_matmul_stats(j, main, top, bot, w_ref, stats_ref, *, width_padded):
    """3x3 'same' conv over [top | main | bot] as one im2col matmul.

    main: (TH, W, C) bf16; top/bot: (1, W, C) bf16 halo rows (already zeroed at
    the image borders).  If width_padded, W already includes the two zero
    padding columns; otherwise they are added here.  Accumulates per-channel
    [sum, sumsq] of the f32 conv output into stats_ref across the 'arbitrary'
    grid axis j.  Returns the f32 (TH, W2, Cout) conv result.
    """
    col = jnp.concatenate([top, main, bot], axis=0)            # (TH+2, W, C)
    if not width_padded:
        z = jnp.zeros((col.shape[0], 1, col.shape[2]), col.dtype)
        col = jnp.concatenate([z, col, z], axis=1)             # (TH+2, W+2, C)
    th = main.shape[0]
    w2 = col.shape[1] - 2
    c = col.shape[2]

    taps = [col[dy:dy + th, dx:dx + w2, :]
            for dy in range(3) for dx in range(3)]
    patches = jnp.concatenate(taps, axis=-1).reshape(th * w2, 9 * c)   # im2col

    y = jnp.dot(patches, w_ref[...], preferred_element_type=jnp.float32)

    part = jnp.concatenate([jnp.sum(y, axis=0, keepdims=True),
                            jnp.sum(y * y, axis=0, keepdims=True)], axis=0)

    @pl.when(j == 0)
    def _():
        stats_ref[0, 0] = part

    @pl.when(j != 0)
    def _():
        stats_ref[0, 0] += part

    return y.reshape(th, w2, w_ref.shape[-1])


def _pool_conv1_kernel(xm_ref, xt_ref, xb_ref, w_ref, y_ref, stats_ref):
    g, j = pl.program_id(1), pl.program_id(2)
    nrj = pl.num_programs(2)
    rb = g * nrj + j                                   # global row-block index
    last_rb = pl.num_programs(1) * nrj - 1
    c = xm_ref.shape[-1] // 4

    def pool(v):  # 2x2 max-pool: the four window taps are packed along lanes
        return jnp.maximum(jnp.maximum(v[..., 0:c], v[..., c:2 * c]),
                           jnp.maximum(v[..., 2 * c:3 * c], v[..., 3 * c:4 * c]))

    main = pool(xm_ref[0])                             # (TH, W2+2, C) bf16
    top = pool(xt_ref[0])                              # (1,  W2+2, C)
    bot = pool(xb_ref[0])
    zero = jnp.zeros_like(top)
    top = jnp.where(rb > 0, top, zero)                 # zero conv pad at borders
    bot = jnp.where(rb < last_rb, bot, zero)

    y = _conv_matmul_stats(j, main, top, bot, w_ref, stats_ref, width_padded=True)
    y_ref[0] = y.astype(y_ref.dtype)                   # pre-BN conv1, bf16


def _bn_relu_conv2_kernel(ym_ref, yt_ref, yb_ref, sc_ref, sh_ref, w_ref,
                          y_ref, stats_ref):
    g, j = pl.program_id(1), pl.program_id(2)
    nrj = pl.num_programs(2)
    rb = g * nrj + j
    last_rb = pl.num_programs(1) * nrj - 1
    sc = sc_ref[0]
    sh = sh_ref[0]

    def act(v):  # folded BN (scale/shift) + ReLU: f32 FMA + max, bf16 out
        return jnp.maximum(v.astype(jnp.float32) * sc + sh, 0.0).astype(jnp.bfloat16)

    main = act(ym_ref[0])                              # (TH, W2, C)
    top = act(yt_ref[0])                               # (1,  W2, C)
    bot = act(yb_ref[0])
    zero = jnp.zeros_like(top)
    top = jnp.where(rb > 0, top, zero)
    bot = jnp.where(rb < last_rb, bot, zero)

    y = _conv_matmul_stats(j, main, top, bot, w_ref, stats_ref, width_padded=False)
    y_ref[0] = y.astype(y_ref.dtype)                   # pre-BN conv2, bf16


# --------------------------------------------------------------------------
# Wrapper helpers
# --------------------------------------------------------------------------
def _prep_conv_weight(w_oihw, cin_pad, cout_pad):
    """PyTorch (Cout, Cin, 3, 3) -> im2col (9*Cin_pad, Cout_pad) bf16, zero-padded."""
    cout, cin = w_oihw.shape[0], w_oihw.shape[1]
    wt = jnp.transpose(w_oihw, (2, 3, 1, 0)).reshape(9, cin, cout)
    wp = jnp.zeros((9, cin_pad, cout_pad), jnp.float32).at[:, :cin, :cout].set(wt)
    return wp.reshape(9 * cin_pad, cout_pad).astype(jnp.bfloat16)


def _pad_channels(v, cp):
    # NOTE: padding MUST stay zero -- padded-lane BN scale relies on gamma==0.
    return jnp.zeros((1, cp), jnp.float32).at[0, :v.shape[0]].set(v)


def _bn_scale_shift(stats, gamma_p, beta_p, count):
    """Fold training-mode BN into per-channel scale/shift from [sum, sumsq].

    stats: (N, groups, 2, C) f32 partial sums from the kernel grid.
    """
    total = jnp.sum(stats[:, :, 0, :], axis=(0, 1))
    total_sq = jnp.sum(stats[:, :, 1, :], axis=(0, 1))
    mean = total / count
    var = jnp.maximum(total_sq / count - mean * mean, 0.0)   # biased variance
    scale = gamma_p[0] * lax.rsqrt(var + BN_EPS)
    shift = beta_p[0] - mean * scale
    return scale.reshape(1, -1), shift.reshape(1, -1)


# --------------------------------------------------------------------------
# Forward
# --------------------------------------------------------------------------
def down_forward(x_nchw, params):
    """Forward of Down: (N, Cin, H, W) -> (N, Cout, H//2, W//2)."""
    w1_t, g1, b1, w2_t, g2, b2 = params
    n, cin, h, w = x_nchw.shape
    assert h % 2 == 0 and w % 2 == 0, "H and W must be even for MaxPool2d(2)"
    h2, w2 = h // 2, w // 2
    cmid, cout = w1_t.shape[0], w2_t.shape[0]
    # Cin is padded only so the 4 packed pool taps fill whole 128-lane tiles.
    cin_q = _round_up(cin, LANE // 4)
    cmid_p, cout_p = _round_up(cmid, LANE), _round_up(cout, LANE)

    vmem_limit = _vmem_limit_bytes()
    r_total = n * h2 * w2

    # ---- layout glue (one fused XLA copy): NCHW -> NHWC bf16, pad channels,
    #      pack the four 2x2-pool taps into lanes, pre-pad conv columns -------
    x = x_nchw.astype(jnp.bfloat16)
    x = jnp.pad(x, ((0, 0), (0, cin_q - cin), (0, 0), (0, 0)))
    x = jnp.transpose(x, (0, 2, 3, 1))                                 # (N,H,W,Cq)
    x4 = (x.reshape(n, h2, 2, w2, 2, cin_q)
           .transpose(0, 1, 3, 2, 4, 5)
           .reshape(n, h2, w2, 4 * cin_q))                             # taps on lanes
    x4 = jnp.pad(x4, ((0, 0), (0, 0), (1, 1), (0, 0)))                 # conv W pad

    w1_im = _prep_conv_weight(w1_t, cin_q, cmid_p)                     # (9*Cq,  Cmid_p)
    w2_im = _prep_conv_weight(w2_t, cmid_p, cout_p)                    # (9*Cmid_p, Cout_p)
    g1_p, b1_p = _pad_channels(g1, cmid_p), _pad_channels(b1, cmid_p)
    g2_p, b2_p = _pad_channels(g2, cout_p), _pad_channels(b2, cout_p)

    # ---- pass 1: maxpool(2) + conv1 (pre-BN), accumulate BN1 sum/sumsq ------
    th1, grp1, nr1 = _pick_tiling(h2, w2, 4 * cin_q, 9 * cin_q, cmid_p, vmem_limit)
    row1 = lambda i, g, j: (i, g * nr1 + j, 0, 0)
    top1 = lambda i, g, j: (i, jnp.maximum((g * nr1 + j) * th1 - 1, 0), 0, 0)
    bot1 = lambda i, g, j: (i, jnp.minimum((g * nr1 + j) * th1 + th1, h2 - 1), 0, 0)

    x4_bytes = x4.size * 2
    y1, st1 = pl.pallas_call(
        _pool_conv1_kernel,
        grid=(n, grp1, nr1),
        in_specs=[
            pl.BlockSpec((1, th1, w2 + 2, 4 * cin_q), row1),
            pl.BlockSpec((1, 1, w2 + 2, 4 * cin_q), top1),
            pl.BlockSpec((1, 1, w2 + 2, 4 * cin_q), bot1),
            pl.BlockSpec((9 * cin_q, cmid_p), lambda i, g, j: (0, 0)),
        ],
        out_specs=(
            pl.BlockSpec((1, th1, w2, cmid_p), row1),
            pl.BlockSpec((1, 1, 2, cmid_p), lambda i, g, j: (i, g, 0, 0)),
        ),
        out_shape=(
            jax.ShapeDtypeStruct((n, h2, w2, cmid_p), jnp.bfloat16),
            jax.ShapeDtypeStruct((n, grp1, 2, cmid_p), jnp.float32),
        ),
        compiler_params=pltpu.CompilerParams(
            dimension_semantics=("parallel", "parallel", "arbitrary"),
            vmem_limit_bytes=vmem_limit),
        cost_estimate=pl.CostEstimate(
            flops=2 * r_total * 9 * cin_q * cmid_p,
            transcendentals=0,
            bytes_accessed=x4_bytes + 2 * x4_bytes // th1 + w1_im.size * 2
            + r_total * cmid_p * 2 + n * grp1 * 2 * cmid_p * 4),
    )(x4, x4, x4, w1_im)

    sc1, sh1 = _bn_scale_shift(st1, g1_p, b1_p, float(r_total))

    # ---- pass 2: BN1 + ReLU + conv2 (pre-BN), accumulate BN2 sum/sumsq ------
    th2, grp2, nr2 = _pick_tiling(h2, w2, cmid_p, 9 * cmid_p, cout_p, vmem_limit)
    row2 = lambda i, g, j: (i, g * nr2 + j, 0, 0)
    top2 = lambda i, g, j: (i, jnp.maximum((g * nr2 + j) * th2 - 1, 0), 0, 0)
    bot2 = lambda i, g, j: (i, jnp.minimum((g * nr2 + j) * th2 + th2, h2 - 1), 0, 0)

    y1_bytes = y1.size * 2
    y2, st2 = pl.pallas_call(
        _bn_relu_conv2_kernel,
        grid=(n, grp2, nr2),
        in_specs=[
            pl.BlockSpec((1, th2, w2, cmid_p), row2),
            pl.BlockSpec((1, 1, w2, cmid_p), top2),
            pl.BlockSpec((1, 1, w2, cmid_p), bot2),
            pl.BlockSpec((1, cmid_p), lambda i, g, j: (0, 0)),
            pl.BlockSpec((1, cmid_p), lambda i, g, j: (0, 0)),
            pl.BlockSpec((9 * cmid_p, cout_p), lambda i, g, j: (0, 0)),
        ],
        out_specs=(
            pl.BlockSpec((1, th2, w2, cout_p), row2),
            pl.BlockSpec((1, 1, 2, cout_p), lambda i, g, j: (i, g, 0, 0)),
        ),
        out_shape=(
            jax.ShapeDtypeStruct((n, h2, w2, cout_p), jnp.bfloat16),
            jax.ShapeDtypeStruct((n, grp2, 2, cout_p), jnp.float32),
        ),
        compiler_params=pltpu.CompilerParams(
            dimension_semantics=("parallel", "parallel", "arbitrary"),
            vmem_limit_bytes=vmem_limit),
        cost_estimate=pl.CostEstimate(
            flops=2 * r_total * 9 * cmid_p * cout_p,
            transcendentals=0,
            bytes_accessed=y1_bytes + 2 * y1_bytes // th2 + w2_im.size * 2
            + r_total * cout_p * 2 + n * grp2 * 2 * cout_p * 4
            + 4 * cmid_p * 4),
    )(y1, y1, y1, sc1, sh1, w2_im)

    sc2, sh2 = _bn_scale_shift(st2, g2_p, b2_p, float(r_total))

    # ---- epilogue in plain JAX: BN2 + ReLU fused with the channel slice and
    #      NHWC -> NCHW transpose XLA performs anyway (no third pallas_call) --
    out = jnp.maximum(y2.astype(jnp.float32) * sc2.reshape(1, 1, 1, -1)
                      + sh2.reshape(1, 1, 1, -1), 0.0)
    return jnp.transpose(out[..., :cout], (0, 3, 1, 2))


def init_down_params(key, in_channels, out_channels):
    """Deterministic synthetic params in PyTorch layouts:
    conv weights (out, in, 3, 3); BN gamma/beta (C,)."""
    mid = out_channels
    k1, k2 = jax.random.split(key)
    w1 = (jax.random.normal(k1, (mid, in_channels, 3, 3), jnp.float32)
          * (2.0 / (9 * in_channels)) ** 0.5)
    w2 = (jax.random.normal(k2, (out_channels, mid, 3, 3), jnp.float32)
          * (2.0 / (9 * mid)) ** 0.5)
    g1 = jnp.ones((mid,), jnp.float32)
    b1 = jnp.zeros((mid,), jnp.float32)
    g2 = jnp.ones((out_channels,), jnp.float32)
    b2 = jnp.zeros((out_channels,), jnp.float32)
    return (w1, g1, b1, w2, g2, b2)


if __name__ == "__main__":
    key = jax.random.PRNGKey(0)
    kx, kp = jax.random.split(key)

    N, Cin, H, W = 2, 4, 16, 16
    Cout = 8

    x = jax.random.normal(kx, (N, Cin, H, W), jnp.float32)
    params = init_down_params(kp, Cin, Cout)

    y = jax.jit(down_forward)(x, params)
    jax.block_until_ready(y)
    assert y.shape == (N, Cout, H // 2, W // 2), y.shape
    assert bool(jnp.all(jnp.isfinite(y))), "non-finite output"
    print("KERNEL_OK")
</pallas_src>

<mosaic_0001>
module attributes {stable_mosaic.version = 11 : i64} {
  func.func @_pool_conv1_kernel(%arg0: i32, %arg1: i32, %arg2: i32, %arg3: memref<1x8x10x128xbf16, #tpu.memory_space<vmem>>, %arg4: memref<1x1x10x128xbf16, #tpu.memory_space<vmem>>, %arg5: memref<1x1x10x128xbf16, #tpu.memory_space<vmem>>, %arg6: memref<288x128xbf16, #tpu.memory_space<vmem>>, %arg7: memref<1x8x8x128xbf16, #tpu.memory_space<vmem>>, %arg8: memref<1x1x2x128xf32, #tpu.memory_space<vmem>>) attributes {dimension_semantics = [#tpu.dimension_semantics<parallel>, #tpu.dimension_semantics<parallel>, #tpu.dimension_semantics<arbitrary>], iteration_bounds = array<i64: 2, 1, 1>, scalar_prefetch = 0 : i64, scratch_operands = 0 : i64, tpu.core_type = #tpu.core_type<tc>, window_params = [{transform_indices = @transform_0, window_bounds = array<i64: 1, 8, 10, 128>}, {transform_indices = @transform_1, window_bounds = array<i64: 1, 1, 10, 128>}, {transform_indices = @transform_2, window_bounds = array<i64: 1, 1, 10, 128>}, {pipeline_mode = #tpu.pipeline_mode<synchronous>, transform_indices = @transform_3, window_bounds = array<i64: 288, 128>}, {transform_indices = @transform_4, window_bounds = array<i64: 1, 8, 8, 128>}, {transform_indices = @transform_5, window_bounds = array<i64: 1, 1, 2, 128>}]} {
    %c1_i32 = arith.constant 1 : i32
    %0 = arith.muli %arg1, %c1_i32 : i32
    %1 = arith.addi %0, %arg2 : i32
    %c0 = arith.constant 0 : index
    %c0_0 = arith.constant 0 : index
    %c0_1 = arith.constant 0 : index
    %c0_2 = arith.constant 0 : index
    %2 = vector.load %arg3[%c0, %c0_0, %c0_1, %c0_2] : memref<1x8x10x128xbf16, #tpu.memory_space<vmem>>, vector<1x8x10x128xbf16>
    %3 = vector.shape_cast %2 : vector<1x8x10x128xbf16> to vector<8x10x128xbf16>
    %4 = vector.extract_strided_slice %3 {offsets = [0, 0, 0], sizes = [8, 10, 32], strides = [1, 1, 1]} : vector<8x10x128xbf16> to vector<8x10x32xbf16>
    %5 = vector.extract_strided_slice %3 {offsets = [0, 0, 32], sizes = [8, 10, 32], strides = [1, 1, 1]} : vector<8x10x128xbf16> to vector<8x10x32xbf16>
    %6 = arith.maximumf %4, %5 : vector<8x10x32xbf16>
    %7 = vector.extract_strided_slice %3 {offsets = [0, 0, 64], sizes = [8, 10, 32], strides = [1, 1, 1]} : vector<8x10x128xbf16> to vector<8x10x32xbf16>
    %8 = vector.extract_strided_slice %3 {offsets = [0, 0, 96], sizes = [8, 10, 32], strides = [1, 1, 1]} : vector<8x10x128xbf16> to vector<8x10x32xbf16>
    %9 = arith.maximumf %7, %8 : vector<8x10x32xbf16>
    %10 = arith.maximumf %6, %9 : vector<8x10x32xbf16>
    %c0_3 = arith.constant 0 : index
    %c0_4 = arith.constant 0 : index
    %c0_5 = arith.constant 0 : index
    %c0_6 = arith.constant 0 : index
    %11 = vector.load %arg4[%c0_3, %c0_4, %c0_5, %c0_6] : memref<1x1x10x128xbf16, #tpu.memory_space<vmem>>, vector<1x1x10x128xbf16>
    %12 = vector.shape_cast %11 : vector<1x1x10x128xbf16> to vector<1x10x128xbf16>
    %13 = vector.extract_strided_slice %12 {offsets = [0, 0, 0], sizes = [1, 10, 32], strides = [1, 1, 1]} : vector<1x10x128xbf16> to vector<1x10x32xbf16>
    %14 = vector.extract_strided_slice %12 {offsets = [0, 0, 32], sizes = [1, 10, 32], strides = [1, 1, 1]} : vector<1x10x128xbf16> to vector<1x10x32xbf16>
    %15 = arith.maximumf %13, %14 : vector<1x10x32xbf16>
    %16 = vector.extract_strided_slice %12 {offsets = [0, 0, 64], sizes = [1, 10, 32], strides = [1, 1, 1]} : vector<1x10x128xbf16> to vector<1x10x32xbf16>
    %17 = vector.extract_strided_slice %12 {offsets = [0, 0, 96], sizes = [1, 10, 32], strides = [1, 1, 1]} : vector<1x10x128xbf16> to vector<1x10x32xbf16>
    %18 = arith.maximumf %16, %17 : vector<1x10x32xbf16>
    %19 = arith.maximumf %15, %18 : vector<1x10x32xbf16>
    %c0_7 = arith.constant 0 : index
    %c0_8 = arith.constant 0 : index
    %c0_9 = arith.constant 0 : index
    %c0_10 = arith.constant 0 : index
    %20 = vector.load %arg5[%c0_7, %c0_8, %c0_9, %c0_10] : memref<1x1x10x128xbf16, #tpu.memory_space<vmem>>, vector<1x1x10x128xbf16>
    %21 = vector.shape_cast %20 : vector<1x1x10x128xbf16> to vector<1x10x128xbf16>
    %22 = vector.extract_strided_slice %21 {offsets = [0, 0, 0], sizes = [1, 10, 32], strides = [1, 1, 1]} : vector<1x10x128xbf16> to vector<1x10x32xbf16>
    %23 = vector.extract_strided_slice %21 {offsets = [0, 0, 32], sizes = [1, 10, 32], strides = [1, 1, 1]} : vector<1x10x128xbf16> to vector<1x10x32xbf16>
    %24 = arith.maximumf %22, %23 : vector<1x10x32xbf16>
    %25 = vector.extract_strided_slice %21 {offsets = [0, 0, 64], sizes = [1, 10, 32], strides = [1, 1, 1]} : vector<1x10x128xbf16> to vector<1x10x32xbf16>
    %26 = vector.extract_strided_slice %21 {offsets = [0, 0, 96], sizes = [1, 10, 32], strides = [1, 1, 1]} : vector<1x10x128xbf16> to vector<1x10x32xbf16>
    %27 = arith.maximumf %25, %26 : vector<1x10x32xbf16>
    %28 = arith.maximumf %24, %27 : vector<1x10x32xbf16>
    %cst = arith.constant 0.000000e+00 : bf16
    %29 = vector.broadcast %cst : bf16 to vector<1x10x32xbf16>
    %c0_i32 = arith.constant 0 : i32
    %30 = arith.cmpi sgt, %1, %c0_i32 : i32
    %31 = arith.select %30, %19, %29 : vector<1x10x32xbf16>
    %c0_i32_11 = arith.constant 0 : i32
    %32 = arith.cmpi slt, %1, %c0_i32_11 : i32
    %33 = arith.select %32, %28, %29 : vector<1x10x32xbf16>
    %34 = tpu.concatenate %31, %10, %33 in 0 : vector<1x10x32xbf16>, vector<8x10x32xbf16>, vector<1x10x32xbf16> -> vector<10x10x32xbf16>
    %35 = vector.extract_strided_slice %34 {offsets = [0, 0, 0], sizes = [8, 8, 32], strides = [1, 1, 1]} : vector<10x10x32xbf16> to vector<8x8x32xbf16>
    %36 = vector.extract_strided_slice %34 {offsets = [0, 1, 0], sizes = [8, 8, 32], strides = [1, 1, 1]} : vector<10x10x32xbf16> to vector<8x8x32xbf16>
    %37 = vector.extract_strided_slice %34 {offsets = [0, 2, 0], sizes = [8, 8, 32], strides = [1, 1, 1]} : vector<10x10x32xbf16> to vector<8x8x32xbf16>
    %38 = vector.extract_strided_slice %34 {offsets = [1, 0, 0], sizes = [8, 8, 32], strides = [1, 1, 1]} : vector<10x10x32xbf16> to vector<8x8x32xbf16>
    %39 = vector.extract_strided_slice %34 {offsets = [1, 1, 0], sizes = [8, 8, 32], strides = [1, 1, 1]} : vector<10x10x32xbf16> to vector<8x8x32xbf16>
    %40 = vector.extract_strided_slice %34 {offsets = [1, 2, 0], sizes = [8, 8, 32], strides = [1, 1, 1]} : vector<10x10x32xbf16> to vector<8x8x32xbf16>
    %41 = vector.extract_strided_slice %34 {offsets = [2, 0, 0], sizes = [8, 8, 32], strides = [1, 1, 1]} : vector<10x10x32xbf16> to vector<8x8x32xbf16>
    %42 = vector.extract_strided_slice %34 {offsets = [2, 1, 0], sizes = [8, 8, 32], strides = [1, 1, 1]} : vector<10x10x32xbf16> to vector<8x8x32xbf16>
    %43 = vector.extract_strided_slice %34 {offsets = [2, 2, 0], sizes = [8, 8, 32], strides = [1, 1, 1]} : vector<10x10x32xbf16> to vector<8x8x32xbf16>
    %44 = tpu.concatenate %35, %36, %37, %38, %39, %40, %41, %42, %43 in 2 : vector<8x8x32xbf16>, vector<8x8x32xbf16>, vector<8x8x32xbf16>, vector<8x8x32xbf16>, vector<8x8x32xbf16>, vector<8x8x32xbf16>, vector<8x8x32xbf16>, vector<8x8x32xbf16>, vector<8x8x32xbf16> -> vector<8x8x288xbf16>
    %45 = vector.shape_cast %44 : vector<8x8x288xbf16> to vector<64x288xbf16>
    %c0_12 = arith.constant 0 : index
    %c0_13 = arith.constant 0 : index
    %46 = vector.load %arg6[%c0_12, %c0_13] : memref<288x128xbf16, #tpu.memory_space<vmem>>, vector<288x128xbf16>
    %cst_14 = arith.constant dense<0.000000e+00> : vector<64x128xf32>
    %47 = tpu.matmul %45, %46, %cst_14 {dimension_numbers = #tpu.dot_dimension_numbers<[1], [0], [0], [1], [0, 0, 1, 1], [], []>} : vector<64x288xbf16>, vector<288x128xbf16>, vector<64x128xf32> -> vector<64x128xf32>
    %cst_15 = arith.constant dense<0.000000e+00> : vector<128xf32>
    %48 = vector.multi_reduction <add>, %47, %cst_15 [0] : vector<64x128xf32> to vector<128xf32>
    %49 = vector.shape_cast %48 : vector<128xf32> to vector<1x128xf32>
    %50 = arith.mulf %47, %47 : vector<64x128xf32>
    %cst_16 = arith.constant dense<0.000000e+00> : vector<128xf32>
    %51 = vector.multi_reduction <add>, %50, %cst_16 [0] : vector<64x128xf32> to vector<128xf32>
    %52 = vector.shape_cast %51 : vector<128xf32> to vector<1x128xf32>
    %53 = tpu.concatenate %49, %52 in 0 : vector<1x128xf32>, vector<1x128xf32> -> vector<2x128xf32>
    %c0_i32_17 = arith.constant 0 : i32
    %54 = arith.cmpi eq, %arg2, %c0_i32_17 : i32
    %55 = arith.extui %54 : i1 to i32
    %c0_i32_18 = arith.constant 0 : i32
    %56 = arith.cmpi ne, %55, %c0_i32_18 : i32
    scf.if %56 {
      %c0_25 = arith.constant 0 : index
      %c0_26 = arith.constant 0 : index
      %c0_27 = arith.constant 0 : index
      %c0_28 = arith.constant 0 : index
      %65 = vector.load %arg8[%c0_25, %c0_26, %c0_27, %c0_28] : memref<1x1x2x128xf32, #tpu.memory_space<vmem>>, vector<1x1x2x128xf32>
      %66 = vector.shape_cast %65 : vector<1x1x2x128xf32> to vector<2x128xf32>
      %67 = vector.shape_cast %53 : vector<2x128xf32> to vector<1x1x2x128xf32>
      tpu.vector_store %arg8[%c0_25, %c0_26, %c0_27, %c0_28], %67 {strides = array<i32>} : memref<1x1x2x128xf32, #tpu.memory_space<vmem>>, vector<1x1x2x128xf32>,
    } else {
    }
    %c0_i32_19 = arith.constant 0 : i32
    %57 = arith.cmpi ne, %arg2, %c0_i32_19 : i32
    %58 = arith.extui %57 : i1 to i32
    %c0_i32_20 = arith.constant 0 : i32
    %59 = arith.cmpi ne, %58, %c0_i32_20 : i32
    scf.if %59 {
      %c0_25 = arith.constant 0 : index
      %c0_26 = arith.constant 0 : index
      %c0_27 = arith.constant 0 : index
      %c0_28 = arith.constant 0 : index
      %65 = vector.load %arg8[%c0_25, %c0_26, %c0_27, %c0_28] : memref<1x1x2x128xf32, #tpu.memory_space<vmem>>, vector<1x1x2x128xf32>
      %66 = vector.shape_cast %65 : vector<1x1x2x128xf32> to vector<2x128xf32>
      %67 = arith.addf %66, %53 : vector<2x128xf32>
      %c0_29 = arith.constant 0 : index
      %c0_30 = arith.constant 0 : index
      %c0_31 = arith.constant 0 : index
      %c0_32 = arith.constant 0 : index
      %68 = vector.load %arg8[%c0_29, %c0_30, %c0_31, %c0_32] : memref<1x1x2x128xf32, #tpu.memory_space<vmem>>, vector<1x1x2x128xf32>
      %69 = vector.shape_cast %68 : vector<1x1x2x128xf32> to vector<2x128xf32>
      %70 = vector.shape_cast %67 : vector<2x128xf32> to vector<1x1x2x128xf32>
      tpu.vector_store %arg8[%c0_29, %c0_30, %c0_31, %c0_32], %70 {strides = array<i32>} : memref<1x1x2x128xf32, #tpu.memory_space<vmem>>, vector<1x1x2x128xf32>,
    } else {
    }
    %60 = vector.shape_cast %47 : vector<64x128xf32> to vector<8x8x128xf32>
    %61 = arith.truncf %60 : vector<8x8x128xf32> to vector<8x8x128xbf16>
    %c0_21 = arith.constant 0 : index
    %c0_22 = arith.constant 0 : index
    %c0_23 = arith.constant 0 : index
    %c0_24 = arith.constant 0 : index
    %62 = vector.load %arg7[%c0_21, %c0_22, %c0_23, %c0_24] : memref<1x8x8x128xbf16, #tpu.memory_space<vmem>>, vector<1x8x8x128xbf16>
    %63 = vector.shape_cast %62 : vector<1x8x8x128xbf16> to vector<8x8x128xbf16>
    %64 = vector.shape_cast %61 : vector<8x8x128xbf16> to vector<1x8x8x128xbf16>
    tpu.vector_store %arg7[%c0_21, %c0_22, %c0_23, %c0_24], %64 {strides = array<i32>} : memref<1x8x8x128xbf16, #tpu.memory_space<vmem>>, vector<1x8x8x128xbf16>,
    return
  }
  func.func @transform_0(%arg0: i32, %arg1: i32, %arg2: i32) -> (i32, i32, i32, i32) {
    %c1_i32 = arith.constant 1 : i32
    %0 = arith.muli %arg1, %c1_i32 : i32
    %1 = arith.addi %0, %arg2 : i32
    %c0_i32 = arith.constant 0 : i32
    %c0_i32_0 = arith.constant 0 : i32
    %c0_i32_1 = arith.constant 0 : i32
    return %arg0, %1, %c0_i32, %c0_i32_0 : i32, i32, i32, i32
  }
  func.func @transform_1(%arg0: i32, %arg1: i32, %arg2: i32) -> (i32, i32, i32, i32) {
    %c1_i32 = arith.constant 1 : i32
    %0 = arith.muli %arg1, %c1_i32 : i32
    %1 = arith.addi %0, %arg2 : i32
    %c8_i32 = arith.constant 8 : i32
    %2 = arith.muli %1, %c8_i32 : i32
    %c1_i32_0 = arith.constant 1 : i32
    %3 = arith.subi %2, %c1_i32_0 : i32
    %c0_i32 = arith.constant 0 : i32
    %4 = arith.maxsi %3, %c0_i32 : i32
    %c0_i32_1 = arith.constant 0 : i32
    %c0_i32_2 = arith.constant 0 : i32
    %c0_i32_3 = arith.constant 0 : i32
    return %arg0, %4, %c0_i32_1, %c0_i32_2 : i32, i32, i32, i32
  }
  func.func @transform_2(%arg0: i32, %arg1: i32, %arg2: i32) -> (i32, i32, i32, i32) {
    %c1_i32 = arith.constant 1 : i32
    %0 = arith.muli %arg1, %c1_i32 : i32
    %1 = arith.addi %0, %arg2 : i32
    %c8_i32 = arith.constant 8 : i32
    %2 = arith.muli %1, %c8_i32 : i32
    %c8_i32_0 = arith.constant 8 : i32
    %3 = arith.addi %2, %c8_i32_0 : i32
    %c7_i32 = arith.constant 7 : i32
    %4 = arith.minsi %3, %c7_i32 : i32
    %c0_i32 = arith.constant 0 : i32
    %c0_i32_1 = arith.constant 0 : i32
    %c0_i32_2 = arith.constant 0 : i32
    return %arg0, %4, %c0_i32, %c0_i32_1 : i32, i32, i32, i32
  }
  func.func @transform_3(%arg0: i32, %arg1: i32, %arg2: i32) -> (i32, i32) {
    %c0_i32 = arith.constant 0 : i32
    %c0_i32_0 = arith.constant 0 : i32
    %c0_i32_1 = arith.constant 0 : i32
    return %c0_i32, %c0_i32_0 : i32, i32
  }
  func.func @transform_4(%arg0: i32, %arg1: i32, %arg2: i32) -> (i32, i32, i32, i32) {
    %c1_i32 = arith.constant 1 : i32
    %0 = arith.muli %arg1, %c1_i32 : i32
    %1 = arith.addi %0, %arg2 : i32
    %c0_i32 = arith.constant 0 : i32
    %c0_i32_0 = arith.constant 0 : i32
    %c0_i32_1 = arith.constant 0 : i32
    return %arg0, %1, %c0_i32, %c0_i32_0 : i32, i32, i32, i32
  }
  func.func @transform_5(%arg0: i32, %arg1: i32, %arg2: i32) -> (i32, i32, i32, i32) {
    %c0_i32 = arith.constant 0 : i32
    %c0_i32_0 = arith.constant 0 : i32
    %c0_i32_1 = arith.constant 0 : i32
    return %arg0, %arg1, %c0_i32, %c0_i32_0 : i32, i32, i32, i32
  }
}

module attributes {stable_mosaic.version = 11 : i64} {
  func.func @_bn_relu_conv2_kernel(%arg0: i32, %arg1: i32, %arg2: i32, %arg3: memref<1x8x8x128xbf16, #tpu.memory_space<vmem>>, %arg4: memref<1x1x8x128xbf16, #tpu.memory_space<vmem>>, %arg5: memref<1x1x8x128xbf16, #tpu.memory_space<vmem>>, %arg6: memref<1x128xf32, #tpu.memory_space<vmem>>, %arg7: memref<1x128xf32, #tpu.memory_space<vmem>>, %arg8: memref<1152x128xbf16, #tpu.memory_space<vmem>>, %arg9: memref<1x8x8x128xbf16, #tpu.memory_space<vmem>>, %arg10: memref<1x1x2x128xf32, #tpu.memory_space<vmem>>) attributes {dimension_semantics = [#tpu.dimension_semantics<parallel>, #tpu.dimension_semantics<parallel>, #tpu.dimension_semantics<arbitrary>], iteration_bounds = array<i64: 2, 1, 1>, scalar_prefetch = 0 : i64, scratch_operands = 0 : i64, tpu.core_type = #tpu.core_type<tc>, window_params = [{transform_indices = @transform_0, window_bounds = array<i64: 1, 8, 8, 128>}, {transform_indices = @transform_1, window_bounds = array<i64: 1, 1, 8, 128>}, {transform_indices = @transform_2, window_bounds = array<i64: 1, 1, 8, 128>}, {pipeline_mode = #tpu.pipeline_mode<synchronous>, transform_indices = @transform_3, window_bounds = array<i64: 1, 128>}, {pipeline_mode = #tpu.pipeline_mode<synchronous>, transform_indices = @transform_4, window_bounds = array<i64: 1, 128>}, {pipeline_mode = #tpu.pipeline_mode<synchronous>, transform_indices = @transform_5, window_bounds = array<i64: 1152, 128>}, {transform_indices = @transform_6, window_bounds = array<i64: 1, 8, 8, 128>}, {transform_indices = @transform_7, window_bounds = array<i64: 1, 1, 2, 128>}]} {
    %c1_i32 = arith.constant 1 : i32
    %0 = arith.muli %arg1, %c1_i32 : i32
    %1 = arith.addi %0, %arg2 : i32
    %c0 = arith.constant 0 : index
    %c0_0 = arith.constant 0 : index
    %2 = vector.load %arg6[%c0, %c0_0] : memref<1x128xf32, #tpu.memory_space<vmem>>, vector<1x128xf32>
    %3 = vector.shape_cast %2 : vector<1x128xf32> to vector<128xf32>
    %c0_1 = arith.constant 0 : index
    %c0_2 = arith.constant 0 : index
    %4 = vector.load %arg7[%c0_1, %c0_2] : memref<1x128xf32, #tpu.memory_space<vmem>>, vector<1x128xf32>
    %5 = vector.shape_cast %4 : vector<1x128xf32> to vector<128xf32>
    %c0_3 = arith.constant 0 : index
    %c0_4 = arith.constant 0 : index
    %c0_5 = arith.constant 0 : index
    %c0_6 = arith.constant 0 : index
    %6 = vector.load %arg3[%c0_3, %c0_4, %c0_5, %c0_6] : memref<1x8x8x128xbf16, #tpu.memory_space<vmem>>, vector<1x8x8x128xbf16>
    %7 = vector.shape_cast %6 : vector<1x8x8x128xbf16> to vector<8x8x128xbf16>
    %8 = arith.extf %7 : vector<8x8x128xbf16> to vector<8x8x128xf32>
    %9 = vector.shape_cast %3 : vector<128xf32> to vector<1x1x128xf32>
    %10 = vector.broadcast %9 : vector<1x1x128xf32> to vector<8x8x128xf32>
    %11 = arith.mulf %8, %10 : vector<8x8x128xf32>
    %12 = vector.shape_cast %5 : vector<128xf32> to vector<1x1x128xf32>
    %13 = vector.broadcast %12 : vector<1x1x128xf32> to vector<8x8x128xf32>
    %14 = arith.addf %11, %13 : vector<8x8x128xf32>
    %cst = arith.constant 0.000000e+00 : f32
    %15 = vector.broadcast %cst : f32 to vector<8x8x128xf32>
    %16 = arith.maximumf %14, %15 : vector<8x8x128xf32>
    %17 = arith.truncf %16 : vector<8x8x128xf32> to vector<8x8x128xbf16>
    %c0_7 = arith.constant 0 : index
    %c0_8 = arith.constant 0 : index
    %c0_9 = arith.constant 0 : index
    %c0_10 = arith.constant 0 : index
    %18 = vector.load %arg4[%c0_7, %c0_8, %c0_9, %c0_10] : memref<1x1x8x128xbf16, #tpu.memory_space<vmem>>, vector<1x1x8x128xbf16>
    %19 = vector.shape_cast %18 : vector<1x1x8x128xbf16> to vector<1x8x128xbf16>
    %20 = arith.extf %19 : vector<1x8x128xbf16> to vector<1x8x128xf32>
    %21 = vector.shape_cast %3 : vector<128xf32> to vector<1x1x128xf32>
    %22 = vector.broadcast %21 : vector<1x1x128xf32> to vector<1x8x128xf32>
    %23 = arith.mulf %20, %22 : vector<1x8x128xf32>
    %24 = vector.shape_cast %5 : vector<128xf32> to vector<1x1x128xf32>
    %25 = vector.broadcast %24 : vector<1x1x128xf32> to vector<1x8x128xf32>
    %26 = arith.addf %23, %25 : vector<1x8x128xf32>
    %cst_11 = arith.constant 0.000000e+00 : f32
    %27 = vector.broadcast %cst_11 : f32 to vector<1x8x128xf32>
    %28 = arith.maximumf %26, %27 : vector<1x8x128xf32>
    %29 = arith.truncf %28 : vector<1x8x128xf32> to vector<1x8x128xbf16>
    %c0_12 = arith.constant 0 : index
    %c0_13 = arith.constant 0 : index
    %c0_14 = arith.constant 0 : index
    %c0_15 = arith.constant 0 : index
    %30 = vector.load %arg5[%c0_12, %c0_13, %c0_14, %c0_15] : memref<1x1x8x128xbf16, #tpu.memory_space<vmem>>, vector<1x1x8x128xbf16>
    %31 = vector.shape_cast %30 : vector<1x1x8x128xbf16> to vector<1x8x128xbf16>
    %32 = arith.extf %31 : vector<1x8x128xbf16> to vector<1x8x128xf32>
    %33 = vector.shape_cast %3 : vector<128xf32> to vector<1x1x128xf32>
    %34 = vector.broadcast %33 : vector<1x1x128xf32> to vector<1x8x128xf32>
    %35 = arith.mulf %32, %34 : vector<1x8x128xf32>
    %36 = vector.shape_cast %5 : vector<128xf32> to vector<1x1x128xf32>
    %37 = vector.broadcast %36 : vector<1x1x128xf32> to vector<1x8x128xf32>
    %38 = arith.addf %35, %37 : vector<1x8x128xf32>
    %cst_16 = arith.constant 0.000000e+00 : f32
    %39 = vector.broadcast %cst_16 : f32 to vector<1x8x128xf32>
    %40 = arith.maximumf %38, %39 : vector<1x8x128xf32>
    %41 = arith.truncf %40 : vector<1x8x128xf32> to vector<1x8x128xbf16>
    %cst_17 = arith.constant 0.000000e+00 : bf16
    %42 = vector.broadcast %cst_17 : bf16 to vector<1x8x128xbf16>
    %c0_i32 = arith.constant 0 : i32
    %43 = arith.cmpi sgt, %1, %c0_i32 : i32
    %44 = arith.select %43, %29, %42 : vector<1x8x128xbf16>
    %c0_i32_18 = arith.constant 0 : i32
    %45 = arith.cmpi slt, %1, %c0_i32_18 : i32
    %46 = arith.select %45, %41, %42 : vector<1x8x128xbf16>
    %47 = tpu.concatenate %44, %17, %46 in 0 : vector<1x8x128xbf16>, vector<8x8x128xbf16>, vector<1x8x128xbf16> -> vector<10x8x128xbf16>
    %cst_19 = arith.constant 0.000000e+00 : bf16
    %48 = vector.broadcast %cst_19 : bf16 to vector<10x1x128xbf16>
    %49 = tpu.concatenate %48, %47, %48 in 1 : vector<10x1x128xbf16>, vector<10x8x128xbf16>, vector<10x1x128xbf16> -> vector<10x10x128xbf16>
    %50 = vector.extract_strided_slice %49 {offsets = [0, 0, 0], sizes = [8, 8, 128], strides = [1, 1, 1]} : vector<10x10x128xbf16> to vector<8x8x128xbf16>
    %51 = vector.extract_strided_slice %49 {offsets = [0, 1, 0], sizes = [8, 8, 128], strides = [1, 1, 1]} : vector<10x10x128xbf16> to vector<8x8x128xbf16>
    %52 = vector.extract_strided_slice %49 {offsets = [0, 2, 0], sizes = [8, 8, 128], strides = [1, 1, 1]} : vector<10x10x128xbf16> to vector<8x8x128xbf16>
    %53 = vector.extract_strided_slice %49 {offsets = [1, 0, 0], sizes = [8, 8, 128], strides = [1, 1, 1]} : vector<10x10x128xbf16> to vector<8x8x128xbf16>
    %54 = vector.extract_strided_slice %49 {offsets = [1, 1, 0], sizes = [8, 8, 128], strides = [1, 1, 1]} : vector<10x10x128xbf16> to vector<8x8x128xbf16>
    %55 = vector.extract_strided_slice %49 {offsets = [1, 2, 0], sizes = [8, 8, 128], strides = [1, 1, 1]} : vector<10x10x128xbf16> to vector<8x8x128xbf16>
    %56 = vector.extract_strided_slice %49 {offsets = [2, 0, 0], sizes = [8, 8, 128], strides = [1, 1, 1]} : vector<10x10x128xbf16> to vector<8x8x128xbf16>
    %57 = vector.extract_strided_slice %49 {offsets = [2, 1, 0], sizes = [8, 8, 128], strides = [1, 1, 1]} : vector<10x10x128xbf16> to vector<8x8x128xbf16>
    %58 = vector.extract_strided_slice %49 {offsets = [2, 2, 0], sizes = [8, 8, 128], strides = [1, 1, 1]} : vector<10x10x128xbf16> to vector<8x8x128xbf16>
    %59 = tpu.concatenate %50, %51, %52, %53, %54, %55, %56, %57, %58 in 2 : vector<8x8x128xbf16>, vector<8x8x128xbf16>, vector<8x8x128xbf16>, vector<8x8x128xbf16>, vector<8x8x128xbf16>, vector<8x8x128xbf16>, vector<8x8x128xbf16>, vector<8x8x128xbf16>, vector<8x8x128xbf16> -> vector<8x8x1152xbf16>
    %60 = vector.shape_cast %59 : vector<8x8x1152xbf16> to vector<64x1152xbf16>
    %c0_20 = arith.constant 0 : index
    %c0_21 = arith.constant 0 : index
    %61 = vector.load %arg8[%c0_20, %c0_21] : memref<1152x128xbf16, #tpu.memory_space<vmem>>, vector<1152x128xbf16>
    %cst_22 = arith.constant dense<0.000000e+00> : vector<64x128xf32>
    %62 = tpu.matmul %60, %61, %cst_22 {dimension_numbers = #tpu.dot_dimension_numbers<[1], [0], [0], [1], [0, 0, 1, 1], [], []>} : vector<64x1152xbf16>, vector<1152x128xbf16>, vector<64x128xf32> -> vector<64x128xf32>
    %cst_23 = arith.constant dense<0.000000e+00> : vector<128xf32>
    %63 = vector.multi_reduction <add>, %62, %cst_23 [0] : vector<64x128xf32> to vector<128xf32>
    %64 = vector.shape_cast %63 : vector<128xf32> to vector<1x128xf32>
    %65 = arith.mulf %62, %62 : vector<64x128xf32>
    %cst_24 = arith.constant dense<0.000000e+00> : vector<128xf32>
    %66 = vector.multi_reduction <add>, %65, %cst_24 [0] : vector<64x128xf32> to vector<128xf32>
    %67 = vector.shape_cast %66 : vector<128xf32> to vector<1x128xf32>
    %68 = tpu.concatenate %64, %67 in 0 : vector<1x128xf32>, vector<1x128xf32> -> vector<2x128xf32>
    %c0_i32_25 = arith.constant 0 : i32
    %69 = arith.cmpi eq, %arg2, %c0_i32_25 : i32
    %70 = arith.extui %69 : i1 to i32
    %c0_i32_26 = arith.constant 0 : i32
    %71 = arith.cmpi ne, %70, %c0_i32_26 : i32
    scf.if %71 {
      %c0_33 = arith.constant 0 : index
      %c0_34 = arith.constant 0 : index
      %c0_35 = arith.constant 0 : index
      %c0_36 = arith.constant 0 : index
      %80 = vector.load %arg10[%c0_33, %c0_34, %c0_35, %c0_36] : memref<1x1x2x128xf32, #tpu.memory_space<vmem>>, vector<1x1x2x128xf32>
      %81 = vector.shape_cast %80 : vector<1x1x2x128xf32> to vector<2x128xf32>
      %82 = vector.shape_cast %68 : vector<2x128xf32> to vector<1x1x2x128xf32>
      tpu.vector_store %arg10[%c0_33, %c0_34, %c0_35, %c0_36], %82 {strides = array<i32>} : memref<1x1x2x128xf32, #tpu.memory_space<vmem>>, vector<1x1x2x128xf32>,
    } else {
    }
    %c0_i32_27 = arith.constant 0 : i32
    %72 = arith.cmpi ne, %arg2, %c0_i32_27 : i32
    %73 = arith.extui %72 : i1 to i32
    %c0_i32_28 = arith.constant 0 : i32
    %74 = arith.cmpi ne, %73, %c0_i32_28 : i32
    scf.if %74 {
      %c0_33 = arith.constant 0 : index
      %c0_34 = arith.constant 0 : index
      %c0_35 = arith.constant 0 : index
      %c0_36 = arith.constant 0 : index
      %80 = vector.load %arg10[%c0_33, %c0_34, %c0_35, %c0_36] : memref<1x1x2x128xf32, #tpu.memory_space<vmem>>, vector<1x1x2x128xf32>
      %81 = vector.shape_cast %80 : vector<1x1x2x128xf32> to vector<2x128xf32>
      %82 = arith.addf %81, %68 : vector<2x128xf32>
      %c0_37 = arith.constant 0 : index
      %c0_38 = arith.constant 0 : index
      %c0_39 = arith.constant 0 : index
      %c0_40 = arith.constant 0 : index
      %83 = vector.load %arg10[%c0_37, %c0_38, %c0_39, %c0_40] : memref<1x1x2x128xf32, #tpu.memory_space<vmem>>, vector<1x1x2x128xf32>
      %84 = vector.shape_cast %83 : vector<1x1x2x128xf32> to vector<2x128xf32>
      %85 = vector.shape_cast %82 : vector<2x128xf32> to vector<1x1x2x128xf32>
      tpu.vector_store %arg10[%c0_37, %c0_38, %c0_39, %c0_40], %85 {strides = array<i32>} : memref<1x1x2x128xf32, #tpu.memory_space<vmem>>, vector<1x1x2x128xf32>,
    } else {
    }
    %75 = vector.shape_cast %62 : vector<64x128xf32> to vector<8x8x128xf32>
    %76 = arith.truncf %75 : vector<8x8x128xf32> to vector<8x8x128xbf16>
    %c0_29 = arith.constant 0 : index
    %c0_30 = arith.constant 0 : index
    %c0_31 = arith.constant 0 : index
    %c0_32 = arith.constant 0 : index
    %77 = vector.load %arg9[%c0_29, %c0_30, %c0_31, %c0_32] : memref<1x8x8x128xbf16, #tpu.memory_space<vmem>>, vector<1x8x8x128xbf16>
    %78 = vector.shape_cast %77 : vector<1x8x8x128xbf16> to vector<8x8x128xbf16>
    %79 = vector.shape_cast %76 : vector<8x8x128xbf16> to vector<1x8x8x128xbf16>
    tpu.vector_store %arg9[%c0_29, %c0_30, %c0_31, %c0_32], %79 {strides = array<i32>} : memref<1x8x8x128xbf16, #tpu.memory_space<vmem>>, vector<1x8x8x128xbf16>,
    return
  }
  func.func @transform_0(%arg0: i32, %arg1: i32, %arg2: i32) -> (i32, i32, i32, i32) {
    %c1_i32 = arith.constant 1 : i32
    %0 = arith.muli %arg1, %c1_i32 : i32
    %1 = arith.addi %0, %arg2 : i32
    %c0_i32 = arith.constant 0 : i32
    %c0_i32_0 = arith.constant 0 : i32
    %c0_i32_1 = arith.constant 0 : i32
    return %arg0, %1, %c0_i32, %c0_i32_0 : i32, i32, i32, i32
  }
  func.func @transform_1(%arg0: i32, %arg1: i32, %arg2: i32) -> (i32, i32, i32, i32) {
    %c1_i32 = arith.constant 1 : i32
    %0 = arith.muli %arg1, %c1_i32 : i32
    %1 = arith.addi %0, %arg2 : i32
    %c8_i32 = arith.constant 8 : i32
    %2 = arith.muli %1, %c8_i32 : i32
    %c1_i32_0 = arith.constant 1 : i32
    %3 = arith.subi %2, %c1_i32_0 : i32
    %c0_i32 = arith.constant 0 : i32
    %4 = arith.maxsi %3, %c0_i32 : i32
    %c0_i32_1 = arith.constant 0 : i32
    %c0_i32_2 = arith.constant 0 : i32
    %c0_i32_3 = arith.constant 0 : i32
    return %arg0, %4, %c0_i32_1, %c0_i32_2 : i32, i32, i32, i32
  }
  func.func @transform_2(%arg0: i32, %arg1: i32, %arg2: i32) -> (i32, i32, i32, i32) {
    %c1_i32 = arith.constant 1 : i32
    %0 = arith.muli %arg1, %c1_i32 : i32
    %1 = arith.addi %0, %arg2 : i32
    %c8_i32 = arith.constant 8 : i32
    %2 = arith.muli %1, %c8_i32 : i32
    %c8_i32_0 = arith.constant 8 : i32
    %3 = arith.addi %2, %c8_i32_0 : i32
    %c7_i32 = arith.constant 7 : i32
    %4 = arith.minsi %3, %c7_i32 : i32
    %c0_i32 = arith.constant 0 : i32
    %c0_i32_1 = arith.constant 0 : i32
    %c0_i32_2 = arith.constant 0 : i32
    return %arg0, %4, %c0_i32, %c0_i32_1 : i32, i32, i32, i32
  }
  func.func @transform_3(%arg0: i32, %arg1: i32, %arg2: i32) -> (i32, i32) {
    %c0_i32 = arith.constant 0 : i32
    %c0_i32_0 = arith.constant 0 : i32
    %c0_i32_1 = arith.constant 0 : i32
    return %c0_i32, %c0_i32_0 : i32, i32
  }
  func.func @transform_4(%arg0: i32, %arg1: i32, %arg2: i32) -> (i32, i32) {
    %c0_i32 = arith.constant 0 : i32
    %c0_i32_0 = arith.constant 0 : i32
    %c0_i32_1 = arith.constant 0 : i32
    return %c0_i32, %c0_i32_0 : i32, i32
  }
  func.func @transform_5(%arg0: i32, %arg1: i32, %arg2: i32) -> (i32, i32) {
    %c0_i32 = arith.constant 0 : i32
    %c0_i32_0 = arith.constant 0 : i32
    %c0_i32_1 = arith.constant 0 : i32
    return %c0_i32, %c0_i32_0 : i32, i32
  }
  func.func @transform_6(%arg0: i32, %arg1: i32, %arg2: i32) -> (i32, i32, i32, i32) {
    %c1_i32 = arith.constant 1 : i32
    %0 = arith.muli %arg1, %c1_i32 : i32
    %1 = arith.addi %0, %arg2 : i32
    %c0_i32 = arith.constant 0 : i32
    %c0_i32_0 = arith.constant 0 : i32
    %c0_i32_1 = arith.constant 0 : i32
    return %arg0, %1, %c0_i32, %c0_i32_0 : i32, i32, i32, i32
  }
  func.func @transform_7(%arg0: i32, %arg1: i32, %arg2: i32) -> (i32, i32, i32, i32) {
    %c0_i32 = arith.constant 0 : i32
    %c0_i32_0 = arith.constant 0 : i32
    %c0_i32_1 = arith.constant 0 : i32
    return %arg0, %arg1, %c0_i32, %c0_i32_0 : i32, i32, i32, i32
  }
}

</mosaic_0001>

<bundles_post_ra>
// kernel: down_forward.2
= control target key start
LH: loop header
LB: loop body
LE: loop exit
PB: predicated region body
PF: predicated region fallthrough
CT: control target
= control target key end

     0   :  { %s1974_s18 = smov 0   ;;  %s1976_s19 = smov 0   ;;  %s2539_s0 = inlined_call_operand.vmem [shape: bf16[2,8,10,128], index: 0, kind: input, shape index: {}, may-alias: {0,1,2}]   ;;  %s2540_s1 = inlined_call_operand.vmem [shape: bf16[2,8,10,128], index: 1, kind: input, shape index: {}, may-alias: {0,1,2}]   ;;  %s2541_s2 = inlined_call_operand.vmem [shape: bf16[2,8,10,128], index: 2, kind: input, shape index: {}, may-alias: {0,1,2}]   ;;  %s2542_s3 = inlined_call_operand.vmem [shape: bf16[288,128], index: 3, kind: input, shape index: {}]   ;;  %s2543_s4 = inlined_call_operand.vmem [shape: bf16[2,8,8,128], index: 4, kind: output, shape index: {0}]   ;;  %s2544_s5 = inlined_call_operand.vmem [shape: f32[2,1,2,128], index: 5, kind: output, shape index: {1}]  }
   0x1   :  { %s1978_s20 = smov 0  }
   0x2 LB: > { %s35_s1 = sadd.s32 1, %s1934_s19  ;;  %p1657_p0 = scmp.ge.s32.totalorder %s1938_s20, 1  ;;  %s1938_s20 = sphi %s1978_s20, %s16_s20   ;;  %s1934_s19 = sphi %s1976_s19, %s2546_s19   ;;  %s1930_s18 = sphi %s1974_s18, %s2545_s18  }
   0x3   : > { %p37_p1 = scmp.ge.s32.totalorder %s35_s1, 2  ;;  %p299_p2 = scmp.lt.s32.totalorder %s1938_s20, 3 }
   0x5   : > { %s2548_s1 = smov (%p37_p1, %s35_s1), 0  ;;  %p300_p3 = pnand %p1657_p0, %p299_p2 }
   0x6   : > { %p375_p4 = scmp.lt.s32.totalorder (!%p300_p3), %s1930_s18, 1  ;;  %s1940_s24 = smov (!%p300_p3), 96  }
   0x7   : > { %303 = sbr.rel (%p300_p3) target bundleno = 654 (0x28e), region = 36  ;;  %s1942_s25 = smov (!%p300_p3), 32  }
   0x8   : > { %s1943_s26 = smov (!%p300_p3), 64  }
   0xc   : > { %s2550_s18 = smov (!%p375_p4, %s1930_s18), 1  ;;  %v1941_v40 = vmov 0   ;;  %vm992_vm0 = vcmask 261120   ;;  %vm1017_vm1 = vcmask 523264   ;;  %vm1034_vm2 = vcmask 785408  }
   0xd   : > { %s1745_s2 = sshll.u32 %s2550_s18, 6  ;;  %v773_v41 = vunpack.c.l.b16 %v1941_v40  ;;  %s1749_s15 = sshll.u32 %s2550_s18, 5  ;;  %vm1444_vm3 = vcmask 1040384  }
   0xe   : > { %s1998_s23 = scalar_lea.vmem %s2539_s0, %s1745_s2  ;;  %s2520_s2 = scalar_lea.vmem %s2543_s4, %s1749_s15 }
   0xf   : > { %v2001_v0 = vld [vmem:[%s1998_s23 + $0x18] sm:$0xf]  ;;  %v2004_v1 = vld [vmem:[%s1998_s23 + $0x1c] sm:$0x1]  ;;  %v2007_v2 = vld [vmem:[%s1998_s23 + $0x8] sm:$0xf]  ;;  %v2092_v42 = vpack.c.b16 %v773_v41, %v773_v41 }
  0x10   : > { %v467_v3 = vunpack.c.l.bf16 %v2001_v0  ;;  %v468_v4 = vunpack.c.l.bf16 %v2004_v1  ;;  %v2012_v5 = vld [vmem:[%s1998_s23 + $0xc] sm:$0x1]  ;;  %v463_v6 = vunpack.c.l.bf16 %v2007_v2  ;;  %v2017_v8 = vld [vmem:[%s1998_s23 + $0x20] sm:$0xf]  ;;  %v2020_v9 = vld [vmem:[%s1998_s23 + $0x24] sm:$0x1] }
  0x11   : > { %v464_v7 = vunpack.c.l.bf16 %v2012_v5  ;;  %v2027_v11 = vld [vmem:[%s1998_s23 + $0x10] sm:$0xf]  ;;  %v2030_v12 = vld [vmem:[%s1998_s23 + $0x14] sm:$0x1]  ;;  %v2037_v14 = vld [vmem:[%s1998_s23] sm:$0xf]  ;;  %v469_v16 = vunpack.c.l.bf16 %v2017_v8  ;;  %v470_v17 = vunpack.c.l.bf16 %v2020_v9 }
  0x12   : > { %v1846_v10 = vpack.i.bf16 %v468_v4, %v467_v3  ;;  %v2040_v15 = vld [vmem:[%s1998_s23 + $0x4] sm:$0x1]  ;;  %v461_v18 = vunpack.c.l.bf16 %v2037_v14  ;;  %v465_v20 = vunpack.c.l.bf16 %v2027_v11  ;;  %v466_v21 = vunpack.c.l.bf16 %v2030_v12  ;;  %v455_v22 = vld [vmem:[%s1998_s23 + $0x28] sm:$0xf]  ;;  %v456_v23 = vld [vmem:[%s1998_s23 + $0x2c] sm:$0x1] }
  0x13   : > { %v1836_v13 = vpack.i.bf16 %v464_v7, %v463_v6  ;;  %v462_v19 = vunpack.c.l.bf16 %v2040_v15  ;;  %v1851_v25 = vpack.i.bf16 %v470_v17, %v469_v16  ;;  %v471_v26 = vunpack.c.l.bf16 %v455_v22  ;;  %v2064_v29 = vld [vmem:[%s1998_s23 + $0x38] sm:$0xf]  ;;  %v2067_v30 = vld [vmem:[%s1998_s23 + $0x3c] sm:$0x1]  ;;  %v2070_v31 = vld [vmem:[%s1998_s23 + $0x30] sm:$0xf] }
  0x14   : > { %1847 = vrot.lane.b32.xlu1 %v1846_v10, %s1940_s24  ;;  %v472_v27 = vunpack.c.l.bf16 %v456_v23  ;;  %v1841_v28 = vpack.i.bf16 %v466_v21, %v465_v20  ;;  %v2073_v32 = vld [vmem:[%s1998_s23 + $0x34] sm:$0x1]  ;;  %v475_v33 = vunpack.c.l.bf16 %v2064_v29  ;;  %v476_v34 = vunpack.c.l.bf16 %v2067_v30  ;;  %v1766_v41 = vld [vmem:[%s2542_s3 + $0x80] sm:$0xff]  ;;  %s1666_s21 = sshll.u32 %s2550_s18, 1 }
  0x15   : > { %1837 = vrot.lane.b32.xlu0 %v1836_v13, %s1940_s24  ;;  %v1856_v24 = vpack.i.bf16 %v462_v19, %v461_v18  ;;  %v473_v36 = vunpack.c.l.bf16 %v2070_v31  ;;  %v474_v37 = vunpack.c.l.bf16 %v2073_v32  ;;  %v800_v43 = vshll.u32 %v2092_v42, 16 }
  0x16   : > { %v1861_v35 = vpack.i.bf16 %v472_v27, %v471_v26  ;;  %v1871_v38 = vpack.i.bf16 %v476_v34, %v475_v33  ;;  %v798_v44 = vshrl.u32 %v2092_v42, 16  ;;  %v869_v47 = vrot.slane %v2092_v42, 1 }
  0x17   : > { %1857 = vrot.lane.b32.xlu2 %v1856_v24, %s1940_s24  ;;  %v1866_v39 = vpack.i.bf16 %v474_v37, %v473_v36  ;;  %v802_v45 = vrot.slane %v800_v43, 1 }
  0x19   : > { %v2096_v46 = vor.u32 %v802_v45, %v798_v44 }
  0x1c   : > { %1852 = vrot.lane.b32.xlu1 %v1851_v25, %s1940_s24 }
  0x1d   : > { %1842 = vrot.lane.b32.xlu0 %v1841_v28, %s1940_s24 }
  0x1f   : > { %1862 = vrot.lane.b32.xlu2 %v1861_v35, %s1940_s24 }
  0x24   : > { %1872 = vrot.lane.b32.xlu1 %v1871_v38, %s1940_s24  ;;  %v1767_v38 = vld [vmem:[%s2542_s3 + $0x88] sm:$0xff] }
  0x25   : > { %1867 = vrot.lane.b32.xlu0 %v1866_v39, %s1940_s24  ;;  %1387 = vmatpush.bf16.msra.mxu2 %v1767_v38 }
  0x29   : > { %1388 = vmatpush.bf16.msra.mxu2 %v1766_v41 }
  0x2c   : > { %853 = vrot.lane.b32.xlu1 %v2096_v46, %s1942_s25 }
  0x2d   : > { %877 = vrot.lane.b32.xlu0 %v869_v47, %s1943_s26 }
  0x71   : > { %v1858_v48 = vpop.permute.xlu2 %1857 }
  0x72   : > { %v1860_v10 = vunpack.i.h.bf16 %v1858_v48  ;;  %v1859_v1 = vunpack.i.l.bf16 %v1858_v48 }
  0x74   : > { %v2124_v13 = vmax.f32 %v462_v19, %v1860_v10  ;;  %v2130_v5 = vmax.f32 %v461_v18, %v1859_v1 }
  0x76   : > { %v1896_v30 = vpack.i.bf16 %v2124_v13, %v2130_v5 }
  0x79   : > { %v1863_v49 = vpop.permute.xlu2 %1862 }
  0x7a   : > { %v1865_v50 = vunpack.i.h.bf16 %v1863_v49  ;;  %v1864_v51 = vunpack.i.l.bf16 %v1863_v49 }
  0x7c   : > { %v2112_v60 = vmax.f32 %v472_v27, %v1865_v50  ;;  %v2114_v61 = vmax.f32 %v471_v26, %v1864_v51 }
  0x7e   : > { %v1901_v9 = vpack.i.bf16 %v2112_v60, %v2114_v61 }
  0x86   : > { %v1848_v52 = vpop.permute.xlu1 %1847 }
  0x87   : > { %v1850_v53 = vunpack.i.h.bf16 %v1848_v52  ;;  %v1849_v54 = vunpack.i.l.bf16 %v1848_v52  ;;  %v1838_v55 = vpop.permute.xlu0 %1837 }
  0x88   : > { %v1840_v56 = vunpack.i.h.bf16 %v1838_v55  ;;  %v1839_v57 = vunpack.i.l.bf16 %v1838_v55 }
  0x89   : > { %v2106_v58 = vmax.f32 %v468_v4, %v1850_v53  ;;  %v2110_v59 = vmax.f32 %v467_v3, %v1849_v54 }
  0x8a   : > { %v2118_v62 = vmax.f32 %v464_v7, %v1840_v56  ;;  %v2122_v63 = vmax.f32 %v463_v6, %v1839_v57 }
  0x8b   : > { %v1886_v22 = vpack.i.bf16 %v2106_v58, %v2110_v59 }
  0x8c   : > { %v1876_v2 = vpack.i.bf16 %v2118_v62, %v2122_v63 }
  0x8d   : > { %1887 = vrot.lane.b32.xlu1 %v1886_v22, %s1943_s26 }
  0x8e   : > { %v1853_v4 = vpop.permute.xlu1 %1852  ;;  %1877 = vrot.lane.b32.xlu2 %v1876_v2, %s1943_s26 }
  0x8f   : > { %v1855_v0 = vunpack.i.h.bf16 %v1853_v4  ;;  %v1854_v3 = vunpack.i.l.bf16 %v1853_v4  ;;  %v1843_v15 = vpop.permute.xlu0 %1842 }
  0x90   : > { %v1845_v7 = vunpack.i.h.bf16 %v1843_v15  ;;  %v1844_v23 = vunpack.i.l.bf16 %v1843_v15 }
  0x91   : > { %v2136_v6 = vmax.f32 %v470_v17, %v1855_v0  ;;  %v549_v19 = vmax.f32 %v469_v16, %v1854_v3 }
  0x92   : > { %v2143_v24 = vmax.f32 %v466_v21, %v1845_v7  ;;  %v2147_v14 = vmax.f32 %v465_v20, %v1844_v23 }
  0x93   : > { %v1891_v8 = vpack.i.bf16 %v2136_v6, %v549_v19 }
  0x94   : > { %v1881_v12 = vpack.i.bf16 %v2143_v24, %v2147_v14 }
  0x95   : > { %1902 = vrot.lane.b32.xlu1 %v1901_v9, %s1943_s26 }
  0x96   : > { %v1873_v17 = vpop.permute.xlu1 %1872  ;;  %1882 = vrot.lane.b32.xlu0 %v1881_v12, %s1943_s26  ;;  %1892 = vrot.lane.b32.xlu2 %v1891_v8, %s1943_s26 }
  0x97   : > { %v1868_v18 = vpop.permute.xlu0 %1867  ;;  %v1875_v16 = vunpack.i.h.bf16 %v1873_v17  ;;  %v1874_v25 = vunpack.i.l.bf16 %v1873_v17 }
  0x98   : > { %v1870_v26 = vunpack.i.h.bf16 %v1868_v18  ;;  %v1869_v27 = vunpack.i.l.bf16 %v1868_v18 }
  0x99   : > { %v2158_v11 = vmax.f32 %v476_v34, %v1875_v16  ;;  %v2170_v28 = vmax.f32 %v475_v33, %v1874_v25 }
  0x9a   : > { %v2162_v20 = vmax.f32 %v474_v37, %v1870_v26  ;;  %v553_v21 = vmax.f32 %v473_v36, %v1869_v27 }
  0x9b   : > { %v1911_v31 = vpack.i.bf16 %v2158_v11, %v2170_v28 }
  0x9c   : > { %v1906_v34 = vpack.i.bf16 %v2162_v20, %v553_v21 }
  0x9e   : > { %1907 = vrot.lane.b32.xlu2 %v1906_v34, %s1943_s26  ;;  %1897 = vrot.lane.b32.xlu0 %v1896_v30, %s1943_s26  ;;  %v854_v32 = vpop.permute.xlu1 %853 }
  0x9f   : > { %v995_v29 = vsel %vm992_vm0, 0, %v854_v32  ;;  %v878_v33 = vpop.permute.xlu0 %877 }
  0xa0   : > { %v2182_v35 = vsel %vm1017_vm1, %v995_v29, %v878_v33 }
  0xa6   : > { %1912 = vrot.lane.b32.xlu0 %v1911_v31, %s1943_s26 }
  0xe8   : > { %v1878_v36 = vpop.permute.xlu2 %1877 }
  0xe9   : > { %v1880_v51 = vunpack.i.h.bf16 %v1878_v36  ;;  %v1879_v52 = vunpack.i.l.bf16 %v1878_v36 }
  0xeb   : > { %v656_v57 = vmax.f32 %v2118_v62, %v1880_v51  ;;  %v655_v10 = vmax.f32 %v2122_v63, %v1879_v52 }
  0xed   : > { %v672_v3 = vpack.c.bf16 %v656_v57, %v656_v57  ;;  %v2220_v15 = vpack.c.bf16 %v655_v10, %v655_v10 }
  0xef   : > { %v778_v23 = vunpack.c.l.b16 %v672_v3  ;;  %v777_v63 = vunpack.c.l.b16 %v2220_v15 }
  0xf0   : > { %v1893_v37 = vpop.permute.xlu2 %1892 }
  0xf1   : > { %v1894_v39 = vunpack.i.l.bf16 %v1893_v37  ;;  %v1895_v18 = vunpack.i.h.bf16 %v1893_v37  ;;  %v2227_v8 = vpack.c.b16 %v778_v23, %v777_v63  ;;  %v896_v52 = vpack.c.b16 %v777_v63, %v777_v63 }
  0xf3   : > { %v661_v40 = vmax.f32 %v549_v19, %v1894_v39  ;;  %v662_v30 = vmax.f32 %v2136_v6, %v1895_v18  ;;  %v2237_v29 = vrot.slane %v2227_v8, 1 }
  0xf5   : > { %v2190_v43 = vpack.c.bf16 %v661_v40, %v661_v40  ;;  %v678_v6 = vpack.c.bf16 %v662_v30, %v662_v30  ;;  %v1125_v40 = vunpack.c.l.b16 %v2237_v29 }
  0xf7   : > { %v2193_v44 = vunpack.c.l.b16 %v2190_v43 }
  0xf8   : > { %v2195_v45 = vpop.permute.xlu2 %1907 }
  0xf9   : > { %v1909_v48 = vunpack.i.l.bf16 %v2195_v45  ;;  %v2200_v49 = vpack.c.b16 %v2193_v44, %v2193_v44  ;;  %v1910_v3 = vunpack.i.h.bf16 %v2195_v45 }
  0xfb   : > { %v665_v50 = vmax.f32 %v553_v21, %v1909_v48  ;;  %955 = vrot.lane.b32.xlu1 %v2200_v49, %s1943_s26 }
  0xfd   : > { %v2204_v53 = vpack.c.bf16 %v665_v50, %v665_v50 }
  0xff   : > { %v1888_v54 = vpop.permute.xlu1 %1887  ;;  %v2207_v55 = vunpack.c.l.b16 %v2204_v53 }
 0x100   : > { %v1889_v56 = vunpack.i.l.bf16 %v1888_v54 }
 0x101   : > { %v2213_v1 = vpack.c.b16 %v2207_v55, %v2207_v55 }
 0x102   : > { %v659_v4 = vmax.f32 %v2110_v59, %v1889_v56  ;;  %v1890_v59 = vunpack.i.h.bf16 %v1888_v54  ;;  %v784_v54 = vunpack.c.l.b16 %v678_v6 }
 0x103   : > { %959 = vrot.lane.b32.xlu1 %v2213_v1, %s1943_s26 }
 0x104   : > { %v2218_v0 = vpack.c.bf16 %v659_v4, %v659_v4  ;;  %v660_v27 = vmax.f32 %v2106_v58, %v1890_v59 }
 0x106   : > { %v781_v22 = vunpack.c.l.b16 %v2218_v0  ;;  %v676_v33 = vpack.c.bf16 %v660_v27, %v660_v27 }
 0x107   : > { %v1903_v26 = vpop.permute.xlu1 %1902 }
 0x108   : > { %v1883_v7 = vpop.permute.xlu0 %1882  ;;  %v898_v62 = vpack.c.b16 %v781_v22, %v781_v22  ;;  %v1904_v34 = vunpack.i.l.bf16 %v1903_v26  ;;  %v782_v48 = vunpack.c.l.b16 %v676_v33 }
 0x109   : > { %v1885_v2 = vunpack.i.h.bf16 %v1883_v7  ;;  %v1884_v19 = vunpack.i.l.bf16 %v1883_v7  ;;  %v2261_v7 = vpack.c.b16 %v784_v54, %v2193_v44  ;;  %v812_v54 = vshrl.u32 %v2227_v8, 16 }
 0x10a   : > { %909 = vrot.lane.b32.xlu0 %v898_v62, %s1940_s24  ;;  %v663_v37 = vmax.f32 %v2114_v61, %v1904_v34  ;;  %v1905_v61 = vunpack.i.h.bf16 %v1903_v26  ;;  %v2254_v10 = vpack.c.b16 %v782_v48, %v781_v22  ;;  %v666_v22 = vmax.f32 %v2162_v20, %v1910_v3 }
 0x10b   : > { %v658_v9 = vmax.f32 %v2143_v24, %v1885_v2  ;;  %v657_v17 = vmax.f32 %v2147_v14, %v1884_v19  ;;  %v874_v19 = vrot.slane %v2261_v7, 1  ;;  %v1146_v48 = vunpack.c.l.b16 %v869_v47 }
 0x10c   : > { %v873_v23 = vrot.slane %v2254_v10, 1  ;;  %v682_v45 = vpack.c.bf16 %v666_v22, %v666_v22 }
 0x10d   : > { %v674_v16 = vpack.c.bf16 %v658_v9, %v658_v9  ;;  %v2229_v25 = vpack.c.bf16 %v657_v17, %v657_v17 }
 0x10e   : > { %v1131_v44 = vunpack.c.l.b16 %v873_v23  ;;  %v788_v20 = vunpack.c.l.b16 %v682_v45 }
 0x10f   : > { %v780_v12 = vunpack.c.l.b16 %v674_v16  ;;  %v779_v21 = vunpack.c.l.b16 %v2229_v25 }
 0x110   : > { %v1898_v31 = vpop.permute.xlu0 %1897 }
 0x111   : > { %v1899_v32 = vunpack.i.l.bf16 %v1898_v31  ;;  %v2234_v24 = vpack.c.b16 %v780_v12, %v779_v21  ;;  %v897_v14 = vpack.c.b16 %v779_v21, %v779_v21  ;;  %v1900_v38 = vunpack.i.h.bf16 %v1898_v31 }
 0x112   : > { %953 = vrot.lane.b32.xlu0 %v898_v62, %s1943_s26  ;;  %v664_v62 = vmax.f32 %v2112_v60, %v1905_v61  ;;  %v1134_v60 = vunpack.c.l.b16 %v874_v19  ;;  %v835_v61 = vshll.u32 %v2261_v7, 16 }
 0x113   : > { %v653_v36 = vmax.f32 %v2130_v5, %v1899_v32  ;;  %907 = vrot.lane.b32.xlu2 %v897_v14, %s1940_s24  ;;  %951 = vrot.lane.b32.xlu1 %v897_v14, %s1943_s26  ;;  %v872_v58 = vrot.slane %v2234_v24, 1  ;;  %v2249_v5 = vpack.c.bf16 %v663_v37, %v663_v37  ;;  %v654_v56 = vmax.f32 %v2124_v13, %v1900_v38 }
 0x114   : > { %v680_v59 = vpack.c.bf16 %v664_v62, %v664_v62  ;;  %v1188_v18 = vpack.c.b16 %v1134_v60, %v1131_v44  ;;  %v821_v38 = vshll.u32 %v2234_v24, 16 }
 0x115   : > { %v2245_v39 = vpack.c.bf16 %v653_v36, %v653_v36  ;;  %v1128_v41 = vunpack.c.l.b16 %v872_v58  ;;  %v785_v4 = vunpack.c.l.b16 %v2249_v5  ;;  %v670_v13 = vpack.c.bf16 %v654_v56, %v654_v56 }
 0x116   : > { %v786_v17 = vunpack.c.l.b16 %v680_v59 }
 0x117   : > { %v1185_v50 = vpack.c.b16 %v1128_v41, %v1125_v40  ;;  %v775_v51 = vunpack.c.l.b16 %v2245_v39  ;;  %v900_v63 = vpack.c.b16 %v785_v4, %v785_v4  ;;  %v776_v2 = vunpack.c.l.b16 %v670_v13 }
 0x118   : > { %v1913_v16 = vpop.permute.xlu0 %1912  ;;  %v2276_v21 = vpack.c.b16 %v786_v17, %v785_v4  ;;  %v814_v40 = vshll.u32 %v2227_v8, 16  ;;  %v837_v13 = vrot.slane %v835_v61, 1 }
 0x119   : > { %1739 = vmatmul.msk.bf16.vlgmr.msra.gmra.mxu2 %vm992_vm0, %v1185_v50  ;;  %v895_v57 = vpack.c.b16 %v775_v51, %v775_v51  ;;  %v2271_v9 = vpack.c.b16 %v776_v2, %v775_v51  ;;  %v1915_v27 = vunpack.i.h.bf16 %v1913_v16  ;;  %v1914_v12 = vunpack.i.l.bf16 %v1913_v16 }
 0x11a   : > { %905 = vrot.lane.b32.xlu0 %v896_v52, %s1940_s24  ;;  %v875_v31 = vrot.slane %v2276_v21, 1  ;;  %v816_v50 = vrot.slane %v814_v40, 1  ;;  %v1765_v40 = vld [vmem:[%s2542_s3 + $0x78] sm:$0xff] }
 0x11b   : > { %883 = vrot.lane.b32.xlu1 %v872_v58, %s1943_s26  ;;  %903 = vrot.lane.b32.xlu2 %v895_v57, %s1940_s24  ;;  %v870_v26 = vrot.slane %v2271_v9, 1  ;;  %v668_v30 = vmax.f32 %v2158_v11, %v1915_v27  ;;  %v667_v34 = vmax.f32 %v2170_v28, %v1914_v12  ;;  %v807_v3 = vshll.u32 %v2271_v9, 16 }
 0x11c   : > { %v1137_v36 = vunpack.c.l.b16 %v875_v31  ;;  %v2309_v57 = vor.u32 %v816_v50, %v812_v54  ;;  %1800 = vmatpush.bf16.msra.mxu1 %v1765_v40  ;;  %v1764_v54 = vld [vmem:[%s2542_s3 + $0x70] sm:$0xff] }
 0x11d   : > { %v684_v14 = vpack.c.bf16 %v668_v30, %v668_v30  ;;  %v683_v33 = vpack.c.bf16 %v667_v34, %v667_v34  ;;  %v809_v62 = vrot.slane %v807_v3, 1  ;;  %v1761_v3 = vld [vmem:[%s2542_s3 + $0x58] sm:$0xff] }
 0x11f   : > { %v920_v6 = vunpack.c.l.b16 %v684_v14  ;;  %v894_v37 = vunpack.c.l.b16 %v683_v33  ;;  %v1754_v33 = vld [vmem:[%s2542_s3 + $0x20] sm:$0xff] }
 0x120   : > { %1801 = vmatpush.bf16.msra.mxu1 %v1764_v54 }
 0x121   : > { %v2290_v11 = vpack.c.b16 %v920_v6, %v894_v37  ;;  %v902_v8 = vpack.c.b16 %v894_v37, %v894_v37 }
 0x122   : > { %913 = vrot.lane.b32.xlu0 %v900_v63, %s1940_s24 }
 0x123   : > { %934 = vrot.lane.b32.xlu1 %v872_v58, %s1942_s25  ;;  %911 = vrot.lane.b32.xlu2 %v2200_v49, %s1940_s24  ;;  %v796_v49 = vpack.c.b16 %v788_v20, %v2207_v55  ;;  %v929_v28 = vrot.slane %v2290_v11, 1  ;;  %v923_v14 = vshrl.u32 %v2290_v11, 16 }
 0x125   : > { %v876_v32 = vrot.slane %v796_v49, 1  ;;  %v1143_v41 = vunpack.c.l.b16 %v929_v28  ;;  %v847_v59 = vshrl.u32 %v796_v49, 16 }
 0x127   : > { %v1140_v58 = vunpack.c.l.b16 %v876_v32  ;;  %v1194_v51 = vpack.c.b16 %v1146_v48, %v1143_v41 }
 0x129   : > { %1740 = vmatmul.msk.bf16.gmra.mxu2 %vm992_vm0, %v1188_v18  ;;  %v1191_v55 = vpack.c.b16 %v1140_v58, %v1137_v36 }
 0x12a   : > { %957 = vrot.lane.b32.xlu0 %v900_v63, %s1943_s26  ;;  %v805_v63 = vshrl.u32 %v2271_v9, 16  ;;  %v840_v9 = vshrl.u32 %v2276_v21, 16 }
 0x12b   : > { %936 = vrot.lane.b32.xlu2 %v873_v23, %s1942_s25  ;;  %879 = vrot.lane.b32.xlu1 %v870_v26, %s1943_s26 }
 0x12c   : > { %v2327_v2 = vor.u32 %v809_v62, %v805_v63  ;;  %v1760_v63 = vld [vmem:[%s2542_s3 + $0x50] sm:$0xff] }
 0x132   : > { %949 = vrot.lane.b32.xlu0 %v896_v52, %s1943_s26  ;;  %v819_v52 = vshrl.u32 %v2234_v24, 16  ;;  %v826_v24 = vshrl.u32 %v2254_v10, 16 }
 0x133   : > { %940 = vrot.lane.b32.xlu2 %v875_v31, %s1942_s25  ;;  %887 = vrot.lane.b32.xlu1 %v874_v19, %s1943_s26 }
 0x139   : > { %1741 = vmatmul.msk.bf16.gmra.mxu2 %vm992_vm0, %v1191_v55 }
 0x13a   : > { %881 = vrot.lane.b32.xlu0 %v2237_v29, %s1943_s26 }
 0x13b   : > { %932 = vrot.lane.b32.xlu2 %v2237_v29, %s1942_s25  ;;  %938 = vrot.lane.b32.xlu1 %v874_v19, %s1942_s25  ;;  %v823_v29 = vrot.slane %v821_v38, 1  ;;  %v1752_v38 = vld [vmem:[%s2542_s3 + $0x10] sm:$0xff] }
 0x13d   : > { %v2307_v56 = vor.u32 %v823_v29, %v819_v52 }
 0x142   : > { %885 = vrot.lane.b32.xlu0 %v873_v23, %s1943_s26  ;;  %v833_v23 = vshrl.u32 %v2261_v7, 16  ;;  %v842_v7 = vshll.u32 %v2276_v21, 16 }
 0x143   : > { %915 = vrot.lane.b32.xlu2 %v2213_v1, %s1940_s24  ;;  %930 = vrot.lane.b32.xlu1 %v870_v26, %s1942_s25  ;;  %v828_v1 = vshll.u32 %v2254_v10, 16  ;;  %v849_v10 = vshll.u32 %v796_v49, 16 }
 0x144   : > { %v2325_v22 = vor.u32 %v837_v13, %v833_v23  ;;  %v844_v45 = vrot.slane %v842_v7, 1 }
 0x145   : > { %v830_v47 = vrot.slane %v828_v1, 1  ;;  %v851_v19 = vrot.slane %v849_v10, 1  ;;  %v1750_v1 = vld [vmem:[%s2542_s3] sm:$0xff]  ;;  %v1759_v10 = vld [vmem:[%s2542_s3 + $0x48] sm:$0xff] }
 0x146   : > { %v845_v60 = vor.u32 %v844_v45, %v840_v9  ;;  %v1758_v45 = vld [vmem:[%s2542_s3 + $0x40] sm:$0xff] }
 0x147   : > { %v831_v4 = vor.u32 %v830_v47, %v826_v24  ;;  %v2334_v44 = vor.u32 %v851_v19, %v847_v59  ;;  %v1763_v24 = vld [vmem:[%s2542_s3 + $0x68] sm:$0xff] }
 0x148   : > { %1802 = vmatpush.bf16.msra.mxu1 %v1763_v24 }
 0x149   : > { %1742 = vmatmul.msk.bf16.gmra.mxu2 %vm992_vm0, %v1194_v51  ;;  %v1751_v51 = vld [vmem:[%s2542_s3 + $0x8] sm:$0xff] }
 0x14a   : > { %889 = vrot.lane.b32.xlu0 %v875_v31, %s1943_s26  ;;  %v1755_v31 = vld [vmem:[%s2542_s3 + $0x28] sm:$0xff] }
 0x14b   : > { %859 = vrot.lane.b32.xlu2 %v2307_v56, %s1942_s25  ;;  %857 = vrot.lane.b32.xlu1 %v2309_v57, %s1942_s25 }
 0x152   : > { %917 = vrot.lane.b32.xlu0 %v902_v8, %s1940_s24 }
 0x153   : > { %979 = vrot.lane.b32.xlu2 %v831_v4, %s1940_s24  ;;  %891 = vrot.lane.b32.xlu1 %v876_v32, %s1943_s26 }
 0x15a   : > { %981 = vrot.lane.b32.xlu0 %v2325_v22, %s1940_s24 }
 0x15b   : > { %861 = vrot.lane.b32.xlu1 %v831_v4, %s1942_s25  ;;  %855 = vrot.lane.b32.xlu2 %v2327_v2, %s1942_s25 }
 0x162   : > { %985 = vrot.lane.b32.xlu0 %v2334_v44, %s1940_s24 }
 0x163   : > { %942 = vrot.lane.b32.xlu1 %v876_v32, %s1942_s25  ;;  %944 = vrot.lane.b32.xlu2 %v929_v28, %s1942_s25 }
 0x16a   : > { %977 = vrot.lane.b32.xlu0 %v2307_v56, %s1940_s24 }
 0x16b   : > { %865 = vrot.lane.b32.xlu1 %v845_v60, %s1942_s25  ;;  %863 = vrot.lane.b32.xlu2 %v2325_v22, %s1942_s25 }
 0x16d   : > { %v2347_v17 = vpop.permute.xlu2 %907  ;;  %v956_v18 = vpop.permute.xlu1 %955 }
 0x172   : > { %961 = vrot.lane.b32.xlu0 %v902_v8, %s1943_s26 }
 0x173   : > { %963 = vrot.lane.b32.xlu1 %v2092_v42, %s1943_s26  ;;  %983 = vrot.lane.b32.xlu2 %v845_v60, %s1940_s24  ;;  %v1757_v42 = vld [vmem:[%s2542_s3 + $0x38] sm:$0xff] }
 0x174   : > { %1323 = vmatpush.bf16.msra.mxu0 %v1757_v42  ;;  %1792 = vmatpush.bf16.msra.mxu3 %v1757_v42 }
 0x175   : > { %v904_v16 = vpop.permute.xlu2 %903  ;;  %v960_v27 = vpop.permute.xlu1 %959 }
 0x176   : > { %v2355_v20 = vsel %vm1034_vm2, %v2182_v35, %v904_v16  ;;  %v1756_v35 = vld [vmem:[%s2542_s3 + $0x30] sm:$0xff] }
 0x178   : > { %1324 = vmatpush.bf16.msra.mxu0 %v1756_v35  ;;  %1793 = vmatpush.bf16.msra.mxu3 %v1756_v35 }
 0x17a   : > { %989 = vrot.lane.b32.xlu0 %v2096_v46, %s1940_s24  ;;  %v925_v46 = vshll.u32 %v2290_v11, 16  ;;  %v1753_v11 = vld [vmem:[%s2542_s3 + $0x18] sm:$0xff] }
 0x17b   : > { %975 = vrot.lane.b32.xlu2 %v2309_v57, %s1940_s24 }
 0x17c   : > { %v2361_v26 = vpop.permute.xlu0 %909  ;;  %v927_v34 = vrot.slane %v925_v46, 1  ;;  %1325 = vmatpush.bf16.msra.mxu0 %v1755_v31  ;;  %1794 = vmatpush.bf16.msra.mxu3 %v1755_v31  ;;  %v1123_v46 = vunpack.c.l.b16 %v2355_v20 }
 0x17d   : > { %v2363_v12 = vpop.permute.xlu2 %911 }
 0x17e   : > { %v2387_v58 = vor.u32 %v927_v34, %v923_v14 }
 0x180   : > { %1326 = vmatpush.bf16.msra.mxu0 %v1754_v33  ;;  %1795 = vmatpush.bf16.msra.mxu3 %v1754_v33 }
 0x183   : > { %867 = vrot.lane.b32.xlu2 %v2334_v44, %s1942_s25 }
 0x184   : > { %v2374_v21 = vpop.permute.xlu0 %953  ;;  %1327 = vmatpush.bf16.msra.mxu0 %v1753_v11  ;;  %1796 = vmatpush.bf16.msra.mxu3 %v1753_v11 }
 0x185   : > { %v952_v49 = vpop.permute.xlu1 %951  ;;  %v937_v30 = vpop.permute.xlu2 %936 }
 0x186   : > { %v1062_v32 = vsel %vm992_vm0, %v831_v4, %v937_v30  ;;  %v1762_v4 = vld [vmem:[%s2542_s3 + $0x60] sm:$0xff] }
 0x187   : > { %v2385_v36 = vsel %vm1017_vm1, %v1062_v32, %v956_v18  ;;  %1803 = vmatpush.bf16.msra.mxu1 %v1762_v4 }
 0x188   : > { %1328 = vmatpush.bf16.msra.mxu0 %v1752_v38  ;;  %1797 = vmatpush.bf16.msra.mxu3 %v1752_v38 }
 0x18b   : > { %987 = vrot.lane.b32.xlu2 %v2387_v58, %s1940_s24  ;;  %1804 = vmatpush.bf16.msra.mxu1 %v1761_v3  ;;  %s442_s24 = scalar_lea.vmem %s2544_s5, %s1666_s21 }
 0x18c   : > { %v906_v6 = vpop.permute.xlu0 %905  ;;  %1329 = vmatpush.bf16.msra.mxu0 %v1751_v51  ;;  %1798 = vmatpush.bf16.msra.mxu3 %v1751_v51 }
 0x18d   : > { %v2391_v37 = vpop.permute.xlu1 %883  ;;  %v941_v55 = vpop.permute.xlu2 %940 }
 0x18e   : > { %v1068_v28 = vsel %vm992_vm0, %v845_v60, %v941_v55 }
 0x18f   : > { %v2404_v41 = vsel %vm1017_vm1, %v1068_v28, %v960_v27  ;;  %1805 = vmatpush.bf16.msra.mxu1 %v1760_v63 }
 0x190   : > { %1330 = vmatpush.bf16.msra.mxu0 %v1750_v1  ;;  %1799 = vmatpush.bf16.msra.mxu3 %v1750_v1 }
 0x193   : > { %1806 = vmatpush.bf16.msra.mxu1 %v1759_v10 }
 0x194   : > { %v2406_v48 = vpop.permute.xlu0 %913  ;;  %1352 = vmatpush.bf16.msrb.mxu0 %v1765_v40 }
 0x195   : > { %v2408_v29 = vpop.permute.xlu1 %934  ;;  %v933_v50 = vpop.permute.xlu2 %932 }
 0x196   : > { %v1056_v52 = vsel %vm992_vm0, %v2309_v57, %v933_v50  ;;  %v1059_v40 = vsel %vm992_vm0, %v2307_v56, %v2408_v29 }
 0x197   : > { %v2422_v47 = vsel %vm1017_vm1, %v1056_v52, %v952_v49  ;;  %1807 = vmatpush.bf16.msra.mxu1 %v1758_v45 }
 0x198   : > { %1353 = vmatpush.bf16.msrb.mxu0 %v1764_v54 }
 0x19c   : > { %v2427_v57 = vpop.permute.xlu0 %957  ;;  %1354 = vmatpush.bf16.msrb.mxu0 %v1763_v24 }
 0x19d   : > { %v2429_v8 = vpop.permute.xlu2 %915  ;;  %v880_v61 = vpop.permute.xlu1 %879 }
 0x1a0   : > { %1355 = vmatpush.bf16.msrb.mxu0 %v1762_v4 }
 0x1a4   : > { %v2437_v13 = vpop.permute.xlu0 %949  ;;  %1356 = vmatpush.bf16.msrb.mxu0 %v1761_v3 }
 0x1a5   : > { %v860_v62 = vpop.permute.xlu2 %859  ;;  %v888_v23 = vpop.permute.xlu1 %887 }
 0x1a6   : > { %v1004_v42 = vsel %vm992_vm0, %v2229_v25, %v860_v62 }
 0x1a7   : > { %v1025_v30 = vsel %vm1017_vm1, %v1004_v42, %v2391_v37 }
 0x1a8   : > { %1357 = vmatpush.bf16.msrb.mxu0 %v1760_v63  ;;  %v1042_v25 = vsel %vm1034_vm2, %v1025_v30, %v2361_v26  ;;  %v1080_v26 = vsel %vm1017_vm1, %v1059_v40, %v2374_v21 }
 0x1a9   : > { %v1132_v55 = vunpack.c.l.b16 %v1042_v25 }
 0x1ac   : > { %v882_v19 = vpop.permute.xlu0 %881  ;;  %1358 = vmatpush.bf16.msrb.mxu0 %v1759_v10 }
 0x1ad   : > { %v980_v59 = vpop.permute.xlu2 %979  ;;  %v939_v7 = vpop.permute.xlu1 %938 }
 0x1ae   : > { %v1096_v50 = vsel %vm1034_vm2, %v1080_v26, %v980_v59 }
 0x1af   : > { %v1130_v24 = vunpack.c.l.b16 %v1096_v50 }
 0x1b0   : > { %1359 = vmatpush.bf16.msrb.mxu0 %v1758_v45 }
 0x1b4   : > { %v886_v9 = vpop.permute.xlu0 %885 }
 0x1b5   : > { %v931_v60 = vpop.permute.xlu1 %930  ;;  %v856_v18 = vpop.permute.xlu2 %855 }
 0x1b6   : > { %v998_v16 = vsel %vm992_vm0, %v2245_v39, %v856_v18 }
 0x1b7   : > { %v1021_v27 = vsel %vm1017_vm1, %v998_v16, %v880_v61 }
 0x1b8   : > { %v1038_v35 = vsel %vm1034_vm2, %v1021_v27, %v906_v6 }
 0x1b9   : > { %v1126_v49 = vunpack.c.l.b16 %v1038_v35 }
 0x1bb   : > { %v1183_v34 = vpack.c.b16 %v1126_v49, %v1123_v46 }
 0x1bc   : > { %v890_v31 = vpop.permute.xlu0 %889 }
 0x1bd   : > { %v858_v32 = vpop.permute.xlu1 %857  ;;  %1331 = vmatmul.bf16.vlgmr.msra.gmra.mxu0 %v1183_v34  ;;  %v2457_v14 = vpop.permute.xlu2 %944 }
 0x1be   : > { %v1001_v39 = vsel %vm992_vm0, %v2220_v15, %v858_v32 }
 0x1bf   : > { %v1023_v33 = vsel %vm1017_vm1, %v1001_v39, %v882_v19 }
 0x1c0   : > { %v1040_v20 = vsel %vm1034_vm2, %v1023_v33, %v2347_v17 }
 0x1c1   : > { %v1129_v6 = vunpack.c.l.b16 %v1040_v20 }
 0x1c3   : > { %v1186_v37 = vpack.c.b16 %v1132_v55, %v1129_v6 }
 0x1c4   : > { %v918_v11 = vpop.permute.xlu0 %917 }
 0x1c5   : > { %1336 = vmatmul.bf16.vlgmr.msra.gmra.mxu3 %v1186_v37  ;;  %v892_v28 = vpop.permute.xlu1 %891  ;;  %v864_v38 = vpop.permute.xlu2 %863 }
 0x1c6   : > { %v1010_v15 = vsel %vm992_vm0, %v2190_v43, %v864_v38 }
 0x1c7   : > { %v1029_v17 = vsel %vm1017_vm1, %v1010_v15, %v888_v23 }
 0x1c8   : > { %v1046_v43 = vsel %vm1034_vm2, %v1029_v17, %v2406_v48  ;;  %v1053_v48 = vsel %vm992_vm0, %v2327_v2, %v931_v60 }
 0x1c9   : > { %v1138_v62 = vunpack.c.l.b16 %v1046_v43  ;;  %v1076_v45 = vsel %vm1017_vm1, %v1053_v48, %v2437_v13 }
 0x1cc   : > { %v982_v51 = vpop.permute.xlu0 %981 }
 0x1cd   : > { %v1098_v52 = vsel %vm1034_vm2, %v2385_v36, %v982_v51  ;;  %v862_v54 = vpop.permute.xlu1 %861  ;;  %v984_v1 = vpop.permute.xlu2 %983 }
 0x1ce   : > { %v1133_v61 = vunpack.c.l.b16 %v1098_v52  ;;  %v1007_v56 = vsel %vm992_vm0, %v2218_v0, %v862_v54  ;;  %v1065_v0 = vsel %vm992_vm0, %v2325_v22, %v939_v7 }
 0x1cf   : > { %v1027_v21 = vsel %vm1017_vm1, %v1007_v56, %v886_v9  ;;  %v1084_v19 = vsel %vm1017_vm1, %v1065_v0, %v2427_v57 }
 0x1d0   : > { %v1187_v29 = vpack.c.b16 %v1133_v61, %v1130_v24  ;;  %v1044_v4 = vsel %vm1034_vm2, %v1027_v21, %v2363_v12  ;;  %v1100_v59 = vsel %vm1034_vm2, %v1084_v19, %v984_v1 }
 0x1d1   : > { %v1135_v3 = vunpack.c.l.b16 %v1044_v4  ;;  %v1136_v27 = vunpack.c.l.b16 %v1100_v59 }
 0x1d2   : > { %1365 = vmatmul.bf16.vlgmr.msra.gmra.mxu1 %v1187_v29 }
 0x1d3   : > { %v1189_v36 = vpack.c.b16 %v1138_v62, %v1135_v3 }
 0x1d4   : > { %v986_v23 = vpop.permute.xlu0 %985 }
 0x1d5   : > { %v943_v63 = vpop.permute.xlu1 %942  ;;  %1341 = vmatmul.bf16.gmra.mxu3 %v1189_v36  ;;  %v976_v10 = vpop.permute.xlu2 %975  ;;  %v1102_v12 = vsel %vm1034_vm2, %v2404_v41, %v986_v23 }
 0x1d6   : > { %v1092_v9 = vsel %vm1034_vm2, %v1076_v45, %v976_v10  ;;  %v1139_v18 = vunpack.c.l.b16 %v1102_v12 }
 0x1d7   : > { %v1124_v60 = vunpack.c.l.b16 %v1092_v9 }
 0x1d8   : > { %v1190_v49 = vpack.c.b16 %v1139_v18, %v1136_v27 }
 0x1dc   : > { %v978_v16 = vpop.permute.xlu0 %977 }
 0x1dd   : > { %v1094_v22 = vsel %vm1034_vm2, %v2422_v47, %v978_v16  ;;  %v866_v2 = vpop.permute.xlu1 %865  ;;  %v868_v7 = vpop.permute.xlu2 %867 }
 0x1de   : > { %v1127_v57 = vunpack.c.l.b16 %v1094_v22  ;;  %v1013_v41 = vsel %vm992_vm0, %v2249_v5, %v866_v2  ;;  %v1016_v42 = vsel %vm992_vm0, %v2204_v53, %v868_v7  ;;  %v1071_v53 = vsel %vm992_vm0, %v2334_v44, %v943_v63  ;;  %v1390_v44 = vpop.f32.mrf.mxu2 }
 0x1df   : > { %v1031_v13 = vsel %vm1017_vm1, %v1013_v41, %v890_v31  ;;  %v1033_v35 = vsel %vm1017_vm1, %v1016_v42, %v892_v28 }
 0x1e0   : > { %v1184_v46 = vpack.c.b16 %v1127_v57, %v1124_v60  ;;  %v1048_v30 = vsel %vm1034_vm2, %v1031_v13, %v2429_v8  ;;  %v1050_v47 = vsel %vm1034_vm2, %v1033_v35, %v918_v11  ;;  %v1074_v8 = vsel %vm992_vm0, %v2387_v58, %v2457_v14 }
 0x1e1   : > { %v1141_v34 = vunpack.c.l.b16 %v1048_v30  ;;  %v1144_v32 = vunpack.c.l.b16 %v1050_v47 }
 0x1e2   : > { %1360 = vmatmul.bf16.vlgmr.msrb.gmra.mxu0 %v1184_v46  ;;  %1370 = vmatmul.bf16.gmra.mxu1 %v1190_v49 }
 0x1e3   : > { %v1192_v39 = vpack.c.b16 %v1144_v32, %v1141_v34 }
 0x1e4   : > { %v962_v5 = vpop.permute.xlu0 %961 }
 0x1e5   : > { %1346 = vmatmul.bf16.gmra.mxu3 %v1192_v39  ;;  %v1088_v31 = vsel %vm1017_vm1, %v1071_v53, %v962_v5  ;;  %v988_v25 = vpop.permute.xlu2 %987  ;;  %v964_v33 = vpop.permute.xlu1 %963 }
 0x1e6   : > { %v1104_v20 = vsel %vm1034_vm2, %v1088_v31, %v988_v25  ;;  %v1090_v6 = vsel %vm1017_vm1, %v1074_v8, %v964_v33  ;;  %v1392_v40 = vpop.f32.mrf.mxu2 }
 0x1e7   : > { %v1142_v11 = vunpack.c.l.b16 %v1104_v20 }
 0x1ec   : > { %v990_v55 = vpop.permute.xlu0 %989 }
 0x1ed   : > { %v1106_v37 = vsel %vm1034_vm2, %v1090_v6, %v990_v55 }
 0x1ee   : > { %v1145_v28 = vunpack.c.l.b16 %v1106_v37  ;;  %v1395_v15 = vpop.f32.mrf.mxu2 }
 0x1f0   : > { %v1193_v38 = vpack.c.b16 %v1145_v28, %v1142_v11 }
 0x1f2   : > { %1375 = vmatmul.bf16.gmra.mxu1 %v1193_v38 }
 0x1f6   : > { %v1397_v58 = vpop.f32.mrf.mxu2 }
 0x1fe   : > { %v1400_v43 = vpop.f32.mrf.mxu2 }
 0x206   : > { %v1402_v36 = vpop.f32.mrf.mxu2 }
 0x20e   : > { %v1405_v41 = vpop.f32.mrf.mxu2 }
 0x216   : > { %v1407_v20 = vpop.f32.mrf.mxu2 }
 0x23a   : > { %v1332_v50 = vpop.f32.mrf.mxu0 }
 0x242   : > { %v1334_v52 = vpop.f32.mrf.mxu0 }
 0x248   : > { %v1337_v26 = vpop.f32.mrf.mxu3 }
 0x24f   : > { %v1366_v17 = vpop.f32.mrf.mxu1 }
 0x250   : > { %v1339_v51 = vpop.f32.mrf.mxu3  ;;  %v1367_v14 = vadd.f32 %v1366_v17, %v1337_v26 }
 0x252   : > { %v1396_v61 = vadd.f32 %v1395_v15, %v1367_v14 }
 0x254   : > { %v1425_v7 = vmul.f32 %v1396_v61, %v1396_v61 }
 0x257   : > { %v1368_v54 = vpop.f32.mrf.mxu1 }
 0x258   : > { %v1369_v1 = vadd.f32 %v1368_v54, %v1339_v51  ;;  %v1342_v24 = vpop.f32.mrf.mxu3 }
 0x25a   : > { %v1398_v56 = vadd.f32 %v1397_v58, %v1369_v1 }
 0x25c   : > { %v1776_v21 = vpack.c.bf16 %v1398_v56, %v1396_v61  ;;  %v1426_v13 = vmul.f32 %v1398_v56, %v1398_v56 }
 0x25e   : > { %1789 = vst [vmem:[%s2520_s2 + $0x8] sm:$0xff] %v1776_v21  }
 0x25f   : > { %v1361_v29 = vpop.f32.mrf.mxu0  ;;  %v1371_v4 = vpop.f32.mrf.mxu1 }
 0x260   : > { %v1344_v3 = vpop.f32.mrf.mxu3  ;;  %v1362_v62 = vadd.f32 %v1361_v29, %v1332_v50  ;;  %v1372_v23 = vadd.f32 %v1371_v4, %v1342_v24 }
 0x262   : > { %v1391_v0 = vadd.f32 %v1390_v44, %v1362_v62  ;;  %v1401_v45 = vadd.f32 %v1400_v43, %v1372_v23 }
 0x264   : > { %v1423_v9 = vmul.f32 %v1391_v0, %v1391_v0  ;;  %v1427_v49 = vmul.f32 %v1401_v45, %v1401_v45 }
 0x267   : > { %v1363_v63 = vpop.f32.mrf.mxu0  ;;  %v1373_v10 = vpop.f32.mrf.mxu1 }
 0x268   : > { %v1364_v48 = vadd.f32 %v1363_v63, %v1334_v52  ;;  %v1374_v19 = vadd.f32 %v1373_v10, %v1344_v3  ;;  %v1347_v22 = vpop.f32.mrf.mxu3 }
 0x26a   : > { %v1393_v12 = vadd.f32 %v1392_v40, %v1364_v48  ;;  %v1403_v59 = vadd.f32 %v1402_v36, %v1374_v19 }
 0x26c   : > { %v1410_v18 = vadd.f32 %v1393_v12, %v1391_v0  ;;  %v1424_v16 = vmul.f32 %v1393_v12, %v1393_v12  ;;  %v1771_v27 = vpack.c.bf16 %v1393_v12, %v1391_v0  ;;  %v1781_v2 = vpack.c.bf16 %v1403_v59, %v1401_v45 }
 0x26d   : > { %v1428_v5 = vmul.f32 %v1403_v59, %v1403_v59 }
 0x26e   : > { %v1411_v60 = vadd.f32 %v1410_v18, %v1396_v61  ;;  %v1431_v57 = vadd.f32 %v1424_v16, %v1423_v9  ;;  %1772 = vst [vmem:[%s2520_s2] sm:$0xff] %v1771_v27  }
 0x26f   : > { %1790 = vst [vmem:[%s2520_s2 + $0x10] sm:$0xff] %v1781_v2   ;;  %v1376_v42 = vpop.f32.mrf.mxu1 }
 0x270   : > { %v1432_v35 = vadd.f32 %v1431_v57, %v1425_v7  ;;  %v1412_v46 = vadd.f32 %v1411_v60, %v1398_v56  ;;  %v1377_v34 = vadd.f32 %v1376_v42, %v1347_v22  ;;  %v1349_v31 = vpop.f32.mrf.mxu3 }
 0x272   : > { %v1413_v30 = vadd.f32 %v1412_v46, %v1401_v45  ;;  %v1433_v47 = vadd.f32 %v1432_v35, %v1426_v13  ;;  %v1406_v53 = vadd.f32 %v1405_v41, %v1377_v34 }
 0x274   : > { %v1434_v32 = vadd.f32 %v1433_v47, %v1427_v49  ;;  %v1414_v39 = vadd.f32 %v1413_v30, %v1403_v59  ;;  %v1429_v55 = vmul.f32 %v1406_v53, %v1406_v53 }
 0x276   : > { %v1435_v33 = vadd.f32 %v1434_v32, %v1428_v5  ;;  %v1415_v6 = vadd.f32 %v1414_v39, %v1406_v53 }
 0x277   : > { %v1378_v25 = vpop.f32.mrf.mxu1 }
 0x278   : > { %v1379_v8 = vadd.f32 %v1378_v25, %v1349_v31  ;;  %v1436_v11 = vadd.f32 %v1435_v33, %v1429_v55 }
 0x27a   : > { %v1408_v37 = vadd.f32 %v1407_v20, %v1379_v8 }
 0x27c   : > { %v1416_v28 = vadd.f32 %v1415_v6, %v1408_v37  ;;  %v1430_v38 = vmul.f32 %v1408_v37, %v1408_v37  ;;  %v1786_v44 = vpack.c.bf16 %v1408_v37, %v1406_v53 }
 0x27e   : > { %v1417_v40 = vrot.slane %v1416_v28, 4  ;;  %v1437_v15 = vadd.f32 %v1436_v11, %v1430_v38  ;;  %1791 = vst [vmem:[%s2520_s2 + $0x18] sm:$0xff] %v1786_v44  }
 0x280   : > { %v1418_v26 = vadd.f32 %v1417_v40, %v1416_v28  ;;  %v1438_v50 = vrot.slane %v1437_v15, 4 }
 0x282   : > { %v1419_v17 = vrot.slane %v1418_v26, 2  ;;  %v1439_v51 = vadd.f32 %v1438_v50, %v1437_v15 }
 0x284   : > { %v1420_v58 = vadd.f32 %v1419_v17, %v1418_v26  ;;  %v1440_v14 = vrot.slane %v1439_v51, 2 }
 0x286   : > { %v1421_v52 = vrot.slane %v1420_v58, 1  ;;  %v1441_v54 = vadd.f32 %v1440_v14, %v1439_v51 }
 0x288   : > { %v1442_v1 = vrot.slane %v1441_v54, 1  ;;  %v1422_v24 = vadd.f32 %v1421_v52, %v1420_v58 }
 0x28a   : > { %v1443_v61 = vadd.f32 %v1442_v1, %v1441_v54 }
 0x28c   : > { %v1445_v56 = vsel %vm1444_vm3, %v1422_v24, %v1443_v61 }
 0x28d   : > { %1450 = vst [vmem:[%s442_s24] sm:$0x3] %v1445_v56 }
 0x28e PF: > { %s16_s20 = sadd.s32 1, %s1938_s20   ;;  %s2545_s18 = smov %s1934_s19 }
 0x28f   : > { %p13_p5 = scmp.ge.s32.totalorder %s16_s20, 4   ;;  %s2546_s19 = smov %s2548_s1 }
 0x291   :  { %15 = sbr.rel (!%p13_p5) target bundleno = 2 (0x2), region = 92 }

// kernel: down_forward.3
= control target key start
LH: loop header
LB: loop body
LE: loop exit
PB: predicated region body
PF: predicated region fallthrough
CT: control target
= control target key end

     0   :  { %s2480_s24 = smov 0   ;;  %s2482_s1 = smov 0   ;;  %s2996_s0 = inlined_call_operand.vmem [shape: bf16[2,8,8,128], index: 0, kind: input, shape index: {}, may-alias: {0,1,2}]   ;;  %s2997_s1 = inlined_call_operand.vmem [shape: bf16[2,8,8,128], index: 1, kind: input, shape index: {}, may-alias: {0,1,2}]   ;;  %s2998_s2 = inlined_call_operand.vmem [shape: bf16[2,8,8,128], index: 2, kind: input, shape index: {}, may-alias: {0,1,2}]   ;;  %s2999_s3 = inlined_call_operand.vmem [shape: f32[1,128], index: 3, kind: input, shape index: {}]   ;;  %s3000_s4 = inlined_call_operand.vmem [shape: f32[1,128], index: 4, kind: input, shape index: {}]   ;;  %s3001_s5 = inlined_call_operand.vmem [shape: bf16[1152,128], index: 5, kind: input, shape index: {}]   ;;  %s3002_s6 = inlined_call_operand.vmem [shape: bf16[2,8,8,128], index: 6, kind: output, shape index: {0}]   ;;  %s3003_s7 = inlined_call_operand.vmem [shape: f32[2,1,2,128], index: 7, kind: output, shape index: {1}]  }
   0x1   :  { %s2484_s2 = smov 0  }
   0x2 LB: > { %s37_s25 = sadd.s32 1, %s2433_s1  ;;  %p1953_p0 = scmp.ge.s32.totalorder %s2437_s2, 1  ;;  %s2437_s2 = sphi %s2484_s2, %s18_s2   ;;  %s2433_s1 = sphi %s2482_s1, %s3009_s1   ;;  %s2429_s24 = sphi %s2480_s24, %s3008_s24  }
   0x3   : > { %p39_p1 = scmp.ge.s32.totalorder %s37_s25, 2  ;;  %p346_p2 = scmp.lt.s32.totalorder %s2437_s2, 3 }
   0x5   : > { %s3011_s25 = smov (%p39_p1, %s37_s25), 0  ;;  %p347_p3 = pnand %p1953_p0, %p346_p2 }
   0x6   : > { %p423_p4 = scmp.lt.s32.totalorder (!%p347_p3), %s2429_s24, 1 }
   0x7   : > { %350 = sbr.rel (%p347_p3) target bundleno = 348 (0x15c), region = 44 }
   0xc   : > { %v2265_v0 = vld [vmem:[%s3001_s5 + $0x38] sm:$0xff]  ;;  %v2264_v2 = vld [vmem:[%s3001_s5 + $0x30] sm:$0xff]  ;;  %s3013_s24 = smov (!%p423_p4, %s2429_s24), 1  ;;  %v2439_v3 = vmov 0   ;;  %v2263_v8 = vld [vmem:[%s3001_s5 + $0x28] sm:$0xff]  ;;  %vm678_vm0 = vcmask 1040384  }
   0xd   : > { %v2281_v1 = vld [vmem:[%s3001_s5 + $0xb8] sm:$0xff]  ;;  %2372 = vmatpush.bf16.msra.mxu1 %v2265_v0  ;;  %1454 = vmatpush.bf16.msra.mxu0 %v2265_v0  ;;  %v578_v4 = vunpack.c.l.b16 %v2439_v3  ;;  %v2280_v5 = vld [vmem:[%s3001_s5 + $0xb0] sm:$0xff]  ;;  %s2253_s13 = sshll.u32 %s3013_s24, 5  ;;  %v2279_v14 = vld [vmem:[%s3001_s5 + $0xa8] sm:$0xff]  ;;  %vm679_vm1 = vsmask.f32 256 }
   0xe   : > { %1512 = vmatpush.bf16.msra.mxu2 %v2281_v1  ;;  %v2289_v6 = vld [vmem:[%s3001_s5 + $0xf8] sm:$0xff]  ;;  %v2288_v9 = vld [vmem:[%s3001_s5 + $0xf0] sm:$0xff]  ;;  %s2527_s20 = scalar_lea.vmem %s2996_s0, %s2253_s13  ;;  %v2413_v17 = vld [vmem:[%s2999_s3] ss:$0 sm:$0xff]  ;;  %vm691_vm2 = vcmask 1044480   ;;  %s2965_s17 = scalar_lea.vmem %s3002_s6, %s2253_s13 }
   0xf   : > { %v588_v7 = vpack.c.b16 %v578_v4, %v578_v4  ;;  %1541 = vmatpush.bf16.msra.mxu3 %v2289_v6  ;;  %v2366_v10 = vld [vmem:[%s2527_s20 + $0x8] sm:$0xff]   ;;  %v2367_v11 = vld [vmem:[%s2527_s20 + $0x10] sm:$0xff]   ;;  %v2540_v18 = vld [vmem:[%s3000_s4] ss:$0 sm:$0xff]  ;;  %vm692_vm3 = vsmask.f32 4352 }
  0x10   : > { %v2337_v15 = vunpack.c.h.bf16 %v2366_v10  ;;  %v2340_v16 = vunpack.c.l.bf16 %v2367_v11  ;;  %v2341_v19 = vunpack.c.h.bf16 %v2367_v11  ;;  %v2287_v21 = vld [vmem:[%s3001_s5 + $0xe8] sm:$0xff]  ;;  %v2262_v25 = vld [vmem:[%s3001_s5 + $0x20] sm:$0xff]  ;;  %v2336_v28 = vunpack.c.l.bf16 %v2366_v10  ;;  %vm2556_vm4 = vmand %vm678_vm0, %vm679_vm1  ;;  %s1962_s13 = sshll.u32 %s3013_s24, 1 }
  0x11   : > { %2373 = vmatpush.bf16.msra.mxu1 %v2264_v2  ;;  %1455 = vmatpush.bf16.msra.mxu0 %v2264_v2  ;;  %v599_v12 = vshrl.u32 %v588_v7, 16  ;;  %v602_v13 = vshll.u32 %v588_v7, 16  ;;  %v2331_v26 = vld [vmem:[%s2527_s20] sm:$0xff]   ;;  %v2368_v34 = vld [vmem:[%s2527_s20 + $0x18] sm:$0xff]   ;;  %vm2564_vm5 = vmand %vm691_vm2, %vm692_vm3  ;;  %s487_s20 = scalar_lea.vmem %s3003_s7, %s1962_s13 }
  0x12   : > { %1513 = vmatpush.bf16.msra.mxu2 %v2280_v5  ;;  %v514_v22 = vmul.f32 %v2413_v17, %v2337_v15  ;;  %v515_v23 = vmul.f32 %v2413_v17, %v2340_v16  ;;  %v516_v24 = vmul.f32 %v2413_v17, %v2341_v19  ;;  %v2278_v29 = vld [vmem:[%s3001_s5 + $0xa0] sm:$0xff]  ;;  %v2332_v33 = vunpack.c.l.bf16 %v2331_v26  ;;  %v2261_v46 = vld [vmem:[%s3001_s5 + $0x18] sm:$0xff]  ;;  %v2260_v0 = vld [vmem:[%s3001_s5 + $0x10] sm:$0xff] }
  0x13   : > { %v601_v20 = vrot.slane %v599_v12, 7  ;;  %1542 = vmatpush.bf16.msra.mxu3 %v2288_v9  ;;  %v2345_v38 = vunpack.c.h.bf16 %v2368_v34  ;;  %v2344_v39 = vunpack.c.l.bf16 %v2368_v34  ;;  %v2333_v40 = vunpack.c.h.bf16 %v2331_v26  ;;  %v2286_v43 = vld [vmem:[%s3001_s5 + $0xe0] sm:$0xff]  ;;  %v2277_v50 = vld [vmem:[%s3001_s5 + $0x98] sm:$0xff]  ;;  %v2276_v5 = vld [vmem:[%s3001_s5 + $0x90] sm:$0xff] }
  0x14   : > { %v525_v30 = vadd.f32 %v2540_v18, %v514_v22  ;;  %v526_v31 = vadd.f32 %v2540_v18, %v515_v23  ;;  %v527_v35 = vadd.f32 %v2540_v18, %v516_v24  ;;  %v511_v44 = vmul.f32 %v2413_v17, %v2332_v33  ;;  %v2285_v62 = vld [vmem:[%s3001_s5 + $0xd8] sm:$0xff]  ;;  %v2259_v19 = vld [vmem:[%s3001_s5 + $0x8] sm:$0xff] }
  0x15   : > { %2374 = vmatpush.bf16.msra.mxu1 %v2263_v8  ;;  %1456 = vmatpush.bf16.msra.mxu0 %v2263_v8  ;;  %v604_v27 = vor.u32 %v602_v13, %v601_v20  ;;  %v518_v47 = vmul.f32 %v2413_v17, %v2345_v38  ;;  %v517_v48 = vmul.f32 %v2413_v17, %v2344_v39  ;;  %v2275_v26 = vld [vmem:[%s3001_s5 + $0x88] sm:$0xff]  ;;  %v2269_v32 = vld [vmem:[%s3001_s5 + $0x58] sm:$0xff] }
  0x16   : > { %1514 = vmatpush.bf16.msra.mxu2 %v2279_v14  ;;  %v533_v41 = vmax.f32 %v525_v30, 0.0  ;;  %v534_v42 = vmax.f32 %v526_v31, 0.0  ;;  %v513_v49 = vmul.f32 %v2413_v17, %v2336_v28  ;;  %v522_v53 = vadd.f32 %v2540_v18, %v511_v44 }
  0x17   : > { %v681_v37 = vsel %vm2556_vm4, 0, %v604_v27  ;;  %1543 = vmatpush.bf16.msra.mxu3 %v2287_v21  ;;  %v535_v54 = vmax.f32 %v527_v35, 0.0  ;;  %v529_v55 = vadd.f32 %v2540_v18, %v518_v47  ;;  %v528_v57 = vadd.f32 %v2540_v18, %v517_v48  ;;  %v2273_v48 = vld [vmem:[%s3001_s5 + $0x78] sm:$0xff] }
  0x18   : > { %v2575_v45 = vsel %vm2564_vm5, %v681_v37, 0  ;;  %v541_v51 = vpack.c.bf16 %v533_v41, %v533_v41  ;;  %v542_v52 = vpack.c.bf16 %v534_v42, %v534_v42  ;;  %v512_v58 = vmul.f32 %v2413_v17, %v2333_v40  ;;  %v2283_v37 = vld [vmem:[%s3001_s5 + $0xc8] sm:$0xff]  ;;  %v2258_v40 = vld [vmem:[%s3001_s5] sm:$0xff] }
  0x19   : > { %2375 = vmatpush.bf16.msra.mxu1 %v2262_v25  ;;  %1457 = vmatpush.bf16.msra.mxu0 %v2262_v25  ;;  %v768_v56 = vrot.slane %v2575_v45, 1  ;;  %v530_v61 = vmax.f32 %v522_v53, 0.0  ;;  %v543_v63 = vpack.c.bf16 %v535_v54, %v535_v54  ;;  %v537_v1 = vmax.f32 %v529_v55, 0.0  ;;  %v2297_v55 = vld [vmem:[%s3001_s5 + $0x138] sm:$0xff] }
  0x1a   : > { %1515 = vmatpush.bf16.msra.mxu2 %v2278_v29  ;;  %v582_v59 = vunpack.c.l.b16 %v541_v51  ;;  %v583_v60 = vunpack.c.l.b16 %v542_v52  ;;  %v536_v2 = vmax.f32 %v528_v57, 0.0  ;;  %v523_v3 = vadd.f32 %v2540_v18, %v512_v58  ;;  %v2313_v58 = vld [vmem:[%s3001_s5 + $0x1b8] sm:$0xff] }
  0x1b   : > { %1544 = vmatpush.bf16.msra.mxu3 %v2286_v43  ;;  %v524_v4 = vadd.f32 %v2540_v18, %v513_v49  ;;  %v538_v8 = vpack.c.bf16 %v530_v61, %v530_v61  ;;  %v584_v9 = vunpack.c.l.b16 %v543_v63  ;;  %v545_v10 = vpack.c.bf16 %v537_v1, %v537_v1  ;;  %v2284_v18 = vld [vmem:[%s3001_s5 + $0xd0] sm:$0xff]  ;;  %v2274_v49 = vld [vmem:[%s3001_s5 + $0x80] sm:$0xff] }
  0x1c   : > { %v592_v6 = vpack.c.b16 %v582_v59, %v582_v59  ;;  %v593_v7 = vpack.c.b16 %v583_v60, %v583_v60  ;;  %v544_v11 = vpack.c.bf16 %v536_v2, %v536_v2  ;;  %v531_v12 = vmax.f32 %v523_v3, 0.0  ;;  %v2282_v63 = vld [vmem:[%s3001_s5 + $0xc0] sm:$0xff] }
  0x1d   : > { %2376 = vmatpush.bf16.msra.mxu1 %v2261_v46  ;;  %1458 = vmatpush.bf16.msra.mxu0 %v2261_v46  ;;  %v532_v13 = vmax.f32 %v524_v4, 0.0  ;;  %v579_v20 = vunpack.c.l.b16 %v538_v8  ;;  %v586_v21 = vunpack.c.l.b16 %v545_v10  ;;  %v594_v23 = vpack.c.b16 %v584_v9, %v584_v9  ;;  %v2321_v4 = vld [vmem:[%s3001_s5 + $0x1f8] sm:$0xff] }
  0x1e   : > { %1516 = vmatpush.bf16.msra.mxu2 %v2277_v50  ;;  %v627_v14 = vshrl.u32 %v592_v6, 16  ;;  %v630_v15 = vshll.u32 %v592_v6, 16  ;;  %v634_v16 = vshrl.u32 %v593_v7, 16  ;;  %v637_v17 = vshll.u32 %v593_v7, 16  ;;  %v2272_v6 = vld [vmem:[%s3001_s5 + $0x70] sm:$0xff] }
  0x1f   : > { %1545 = vmatpush.bf16.msra.mxu3 %v2285_v62  ;;  %v585_v22 = vunpack.c.l.b16 %v544_v11  ;;  %v539_v27 = vpack.c.bf16 %v531_v12, %v531_v12  ;;  %v2607_v28 = vpack.c.bf16 %v532_v13, %v532_v13  ;;  %v589_v29 = vpack.c.b16 %v579_v20, %v579_v20  ;;  %v2296_v11 = vld [vmem:[%s3001_s5 + $0x130] sm:$0xff] }
  0x20   : > { %v629_v24 = vrot.slane %v627_v14, 7  ;;  %v636_v25 = vrot.slane %v634_v16, 7  ;;  %v596_v30 = vpack.c.b16 %v586_v21, %v586_v21  ;;  %v641_v33 = vshrl.u32 %v594_v23, 16  ;;  %v2312_v13 = vld [vmem:[%s3001_s5 + $0x1b0] sm:$0xff] }
  0x21   : > { %2377 = vmatpush.bf16.msra.mxu1 %v2260_v0  ;;  %1459 = vmatpush.bf16.msra.mxu0 %v2260_v0  ;;  %v595_v31 = vpack.c.b16 %v585_v22, %v585_v22  ;;  %v644_v38 = vshll.u32 %v594_v23, 16  ;;  %v580_v39 = vunpack.c.l.b16 %v539_v27  ;;  %v606_v41 = vshrl.u32 %v589_v29, 16  ;;  %v2271_v22 = vld [vmem:[%s3001_s5 + $0x68] sm:$0xff] }
  0x22   : > { %1517 = vmatpush.bf16.msra.mxu2 %v2276_v5  ;;  %v632_v34 = vor.u32 %v630_v15, %v629_v24  ;;  %v639_v35 = vor.u32 %v637_v17, %v636_v25  ;;  %v609_v42 = vshll.u32 %v589_v29, 16  ;;  %v655_v43 = vshrl.u32 %v596_v30, 16  ;;  %v2295_v29 = vld [vmem:[%s3001_s5 + $0x128] sm:$0xff] }
  0x23   : > { %1546 = vmatpush.bf16.msra.mxu3 %v2284_v18  ;;  %v658_v44 = vshll.u32 %v596_v30, 16  ;;  %v643_v50 = vrot.slane %v641_v33, 7  ;;  %v648_v51 = vshrl.u32 %v595_v31, 16  ;;  %v608_v54 = vrot.slane %v606_v41, 7  ;;  %v2270_v41 = vld [vmem:[%s3001_s5 + $0x60] sm:$0xff] }
  0x24   : > { %v685_v46 = vsel %vm2556_vm4, 0, %v632_v34  ;;  %v686_v47 = vsel %vm2556_vm4, 0, %v639_v35  ;;  %v657_v57 = vrot.slane %v655_v43, 7  ;;  %v651_v2 = vshll.u32 %v595_v31, 16  ;;  %v2311_v34 = vld [vmem:[%s3001_s5 + $0x1a8] sm:$0xff] }
  0x25   : > { %2378 = vmatpush.bf16.msra.mxu1 %v2259_v19  ;;  %1460 = vmatpush.bf16.msra.mxu0 %v2259_v19  ;;  %v2627_v52 = vsel %vm2564_vm5, %v685_v46, 0  ;;  %v2631_v53 = vsel %vm2564_vm5, %v686_v47, 0  ;;  %v646_v61 = vor.u32 %v644_v38, %v643_v50  ;;  %v650_v62 = vrot.slane %v648_v51, 7  ;;  %v2310_v50 = vld [vmem:[%s3001_s5 + $0x1a0] sm:$0xff]  ;;  %v2319_v51 = vld [vmem:[%s3001_s5 + $0x1e8] sm:$0xff] }
  0x26   : > { %1518 = vmatpush.bf16.msra.mxu2 %v2275_v26  ;;  %v806_v59 = vunpack.c.l.b16 %v2627_v52  ;;  %v809_v60 = vunpack.c.l.b16 %v2631_v53  ;;  %v611_v0 = vor.u32 %v609_v42, %v608_v54  ;;  %v660_v1 = vor.u32 %v658_v44, %v657_v57  ;;  %v2294_v44 = vld [vmem:[%s3001_s5 + $0x120] sm:$0xff] }
  0x27   : > { %1547 = vmatpush.bf16.msra.mxu3 %v2283_v37  ;;  %v581_v3 = vunpack.c.l.b16 %v2607_v28  ;;  %v590_v7 = vpack.c.b16 %v580_v39, %v580_v39  ;;  %v794_v9 = vunpack.c.l.b16 %v2575_v45  ;;  %v653_v12 = vor.u32 %v651_v2, %v650_v62 }
  0x28   : > { %v2652_v5 = vpack.c.b16 %v809_v60, %v806_v59  ;;  %v682_v8 = vsel %vm2556_vm4, 0, %v611_v0  ;;  %v689_v10 = vsel %vm2556_vm4, 0, %v660_v1  ;;  %v2679_v16 = vunpack.c.l.b16 %v768_v56 }
  0x29   : > { %2379 = vmatpush.bf16.msra.mxu1 %v2258_v40  ;;  %1461 = vmatpush.bf16.msra.mxu0 %v2258_v40  ;;  %v2671_v14 = vsel %vm2564_vm5, %v682_v8, 0  ;;  %v2675_v15 = vsel %vm2564_vm5, %v689_v10, 0  ;;  %v591_v17 = vpack.c.b16 %v581_v3, %v581_v3  ;;  %v687_v21 = vsel %vm2556_vm4, 0, %v646_v61  ;;  %v2320_v40 = vld [vmem:[%s3001_s5 + $0x1f0] sm:$0xff]  ;;  %v2293_v61 = vld [vmem:[%s3001_s5 + $0x118] sm:$0xff] }
  0x2a   : > { %1519 = vmatpush.bf16.msra.mxu2 %v2274_v49  ;;  %v797_v18 = vunpack.c.l.b16 %v2671_v14  ;;  %v769_v19 = vrot.slane %v2671_v14, 1  ;;  %v784_v20 = vrot.slane %v2675_v15, 1  ;;  %v688_v56 = vsel %vm2556_vm4, 0, %v653_v12  ;;  %v2292_v8 = vld [vmem:[%s3001_s5 + $0x110] sm:$0xff] }
  0x2b   : > { %1548 = vmatpush.bf16.msra.mxu3 %v2282_v63  ;;  %v613_v23 = vshrl.u32 %v590_v7, 16  ;;  %v616_v24 = vshll.u32 %v590_v7, 16  ;;  %v620_v25 = vshrl.u32 %v591_v17, 16  ;;  %v623_v33 = vshll.u32 %v591_v17, 16  ;;  %v2309_v17 = vld [vmem:[%s3001_s5 + $0x198] sm:$0xff] }
  0x2c   : > { %1472 = vmatmul.bf16.vlgmr.msra.gmra.mxu1 %v2652_v5  ;;  %v968_v26 = vpack.c.b16 %v797_v18, %v794_v9  ;;  %v2693_v27 = vunpack.c.l.b16 %v769_v19  ;;  %v2695_v28 = vunpack.c.l.b16 %v784_v20  ;;  %v2709_v38 = vsel %vm2564_vm5, %v687_v21, 0  ;;  %v2267_v20 = vld [vmem:[%s3001_s5 + $0x48] sm:$0xff] }
  0x2d   : > { %1483 = vmatpush.bf16.msrb.mxu1 %v2273_v48  ;;  %1570 = vmatpush.bf16.msrb.mxu0 %v2297_v55  ;;  %v615_v30 = vrot.slane %v613_v23, 7  ;;  %v622_v31 = vrot.slane %v620_v25, 7  ;;  %v2713_v39 = vsel %vm2564_vm5, %v688_v56, 0  ;;  %v812_v46 = vunpack.c.l.b16 %v2709_v38  ;;  %v2318_v25 = vld [vmem:[%s3001_s5 + $0x1e0] sm:$0xff] }
  0x2e   : > { %1628 = vmatpush.bf16.msrb.mxu2 %v2313_v58  ;;  %1462 = vmatmul.bf16.vlgmr.msra.gmra.mxu0 %v968_v26  ;;  %v970_v35 = vpack.c.b16 %v2693_v27, %v2679_v16  ;;  %v994_v37 = vpack.c.b16 %v2679_v16, %v2695_v28  ;;  %v815_v47 = vunpack.c.l.b16 %v2713_v39  ;;  %v707_v63 = vshll.u32 %v2575_v45, 16  ;;  %v2266_v26 = vld [vmem:[%s3001_s5 + $0x40] sm:$0xff] }
  0x2f   : > { %1657 = vmatpush.bf16.msrb.mxu3 %v2321_v4  ;;  %v618_v42 = vor.u32 %v616_v24, %v615_v30  ;;  %v625_v43 = vor.u32 %v623_v33, %v622_v31  ;;  %v714_v2 = vshll.u32 %v2671_v14, 16  ;;  %v2268_v4 = vld [vmem:[%s3001_s5 + $0x50] sm:$0xff]  ;;  %v705_v10 = vshrl.u32 %v2575_v45, 16  ;;  %v2290_v30 = vld [vmem:[%s3001_s5 + $0x100] sm:$0xff] }
  0x30   : > { %1520 = vmatmul.bf16.vlgmr.msra.gmra.mxu2 %v970_v35  ;;  %v2754_v36 = vpack.c.b16 %v815_v47, %v812_v46  ;;  %v712_v12 = vshrl.u32 %v2671_v14, 16  ;;  %v2291_v14 = vld [vmem:[%s3001_s5 + $0x108] sm:$0xff]  ;;  %v2308_v31 = vld [vmem:[%s3001_s5 + $0x190] sm:$0xff]  ;;  %v2329_v35 = vld [vmem:[%s3001_s5 + $0x238] sm:$0xff] }
  0x31   : > { %1484 = vmatpush.bf16.msrb.mxu1 %v2272_v6  ;;  %1571 = vmatpush.bf16.msrb.mxu0 %v2296_v11  ;;  %v683_v48 = vsel %vm2556_vm4, 0, %v618_v42  ;;  %v684_v49 = vsel %vm2556_vm4, 0, %v625_v43  ;;  %v709_v11 = vrot.slane %v707_v63, 1  ;;  %v772_v43 = vrot.slane %v2627_v52, 1  ;;  %v2327_v63 = vld [vmem:[%s3001_s5 + $0x228] sm:$0xff] }
  0x32   : > { %1629 = vmatpush.bf16.msrb.mxu2 %v2312_v13  ;;  %v696_v54 = vsel %vm2564_vm5, %v683_v48, 0  ;;  %v2740_v55 = vsel %vm2564_vm5, %v684_v49, 0  ;;  %v716_v13 = vrot.slane %v714_v2, 1  ;;  %v2304_v48 = vld [vmem:[%s3001_s5 + $0x170] sm:$0xff]  ;;  %v735_v2 = vshll.u32 %v2627_v52, 16 }
  0x33   : > { %1658 = vmatpush.bf16.msrb.mxu3 %v2320_v40  ;;  %v800_v57 = vunpack.c.l.b16 %v696_v54  ;;  %v770_v58 = vrot.slane %v696_v54, 1  ;;  %v771_v62 = vrot.slane %v2740_v55, 1  ;;  %v803_v3 = vunpack.c.l.b16 %v2740_v55  ;;  %v2317_v40 = vld [vmem:[%s3001_s5 + $0x1d8] sm:$0xff] }
  0x34   : > { %v721_v19 = vshll.u32 %v696_v54, 16  ;;  %v717_v56 = vor.u32 %v716_v13, %v712_v12  ;;  %v719_v23 = vshrl.u32 %v696_v54, 16  ;;  %v2827_v54 = vunpack.c.l.b16 %v772_v43  ;;  %v2316_v12 = vld [vmem:[%s3001_s5 + $0x1d0] sm:$0xff]  ;;  %v2301_v13 = vld [vmem:[%s3001_s5 + $0x158] sm:$0xff] }
  0x35   : > { %1485 = vmatpush.bf16.msrb.mxu1 %v2271_v22  ;;  %1572 = vmatpush.bf16.msrb.mxu0 %v2295_v29  ;;  %v971_v0 = vpack.c.b16 %v800_v57, %v797_v18  ;;  %v2756_v1 = vunpack.c.l.b16 %v770_v58  ;;  %v2765_v7 = vunpack.c.l.b16 %v771_v62  ;;  %v2776_v18 = vpack.c.b16 %v803_v3, %v800_v57  ;;  %v2305_v29 = vld [vmem:[%s3001_s5 + $0x178] sm:$0xff]  ;;  %v2303_v57 = vld [vmem:[%s3001_s5 + $0x168] sm:$0xff] }
  0x36   : > { %1630 = vmatpush.bf16.msrb.mxu2 %v2311_v34  ;;  %v2788_v22 = vor.u32 %v709_v11, %v705_v10  ;;  %v723_v24 = vrot.slane %v721_v19, 1  ;;  %v798_v34 = vunpack.c.l.b16 %v717_v56  ;;  %v977_v42 = vpack.c.b16 %v806_v59, %v803_v3  ;;  %v2328_v59 = vld [vmem:[%s3001_s5 + $0x230] sm:$0xff]  ;;  %v2307_v58 = vld [vmem:[%s3001_s5 + $0x188] sm:$0xff]  ;;  %v2306_v3 = vld [vmem:[%s3001_s5 + $0x180] sm:$0xff] }
  0x37   : > { %1659 = vmatpush.bf16.msrb.mxu3 %v2319_v51  ;;  %v973_v6 = vpack.c.b16 %v2756_v1, %v2693_v27  ;;  %v2783_v21 = vpack.c.b16 %v2765_v7, %v2756_v1  ;;  %v733_v10 = vshrl.u32 %v2627_v52, 16  ;;  %v737_v11 = vrot.slane %v735_v2, 1  ;;  %v2315_v52 = vld [vmem:[%s3001_s5 + $0x1c8] sm:$0xff] }
  0x38   : > { %1549 = vmatmul.bf16.vlgmr.msra.gmra.mxu3 %v971_v0  ;;  %v795_v33 = vunpack.c.l.b16 %v2788_v22  ;;  %v774_v56 = vrot.slane %v2709_v38, 1 }
  0x39   : > { %1486 = vmatpush.bf16.msrb.mxu1 %v2270_v41  ;;  %1573 = vmatpush.bf16.msrb.mxu0 %v2294_v44  ;;  %v724_v41 = vor.u32 %v723_v24, %v719_v23  ;;  %v773_v44 = vrot.slane %v2631_v53, 1  ;;  %v775_v23 = vrot.slane %v2713_v39, 1  ;;  %v2300_v24 = vld [vmem:[%s3001_s5 + $0x150] sm:$0xff] }
  0x3a   : > { %1631 = vmatpush.bf16.msrb.mxu2 %v2310_v50  ;;  %v969_v49 = vpack.c.b16 %v798_v34, %v795_v33  ;;  %v728_v50 = vshll.u32 %v2740_v55, 16 }
  0x3b   : > { %1660 = vmatpush.bf16.msrb.mxu3 %v2318_v25  ;;  %v801_v51 = vunpack.c.l.b16 %v724_v41 }
  0x3c   : > { %1477 = vmatmul.bf16.gmra.mxu1 %v2754_v36  ;;  %v730_v62 = vrot.slane %v728_v50, 1  ;;  %v818_v50 = vunpack.c.l.b16 %v2675_v15 }
  0x3d   : > { %1487 = vmatpush.bf16.msrb.mxu1 %v2269_v32  ;;  %1574 = vmatpush.bf16.msrb.mxu0 %v2293_v61  ;;  %v2829_v32 = vunpack.c.l.b16 %v773_v44  ;;  %v726_v61 = vshrl.u32 %v2740_v55, 16  ;;  %v972_v0 = vpack.c.b16 %v801_v51, %v798_v34  ;;  %v2302_v55 = vld [vmem:[%s3001_s5 + $0x160] sm:$0xff]  ;;  %v2299_v34 = vld [vmem:[%s3001_s5 + $0x148] sm:$0xff]  ;;  %v747_v44 = vshrl.u32 %v2709_v38, 16 }
  0x3e   : > { %1632 = vmatpush.bf16.msrb.mxu2 %v2309_v17  ;;  %1467 = vmatmul.bf16.gmra.mxu0 %v2776_v18  ;;  %v2326_v17 = vld [vmem:[%s3001_s5 + $0x220] sm:$0xff] }
  0x3f   : > { %1661 = vmatpush.bf16.msrb.mxu3 %v2317_v40  ;;  %v2314_v40 = vld [vmem:[%s3001_s5 + $0x1c0] sm:$0xff] }
  0x40   : > { %1525 = vmatmul.bf16.gmra.mxu2 %v2783_v21 }
  0x41   : > { %1488 = vmatpush.bf16.msrb.mxu1 %v2268_v4  ;;  %1575 = vmatpush.bf16.msrb.mxu0 %v2292_v8  ;;  %v2847_v4 = vpack.c.b16 %v2829_v32, %v2827_v54  ;;  %v731_v8 = vor.u32 %v730_v62, %v726_v61  ;;  %v756_v62 = vshll.u32 %v2713_v39, 16 }
  0x42   : > { %1633 = vmatpush.bf16.msrb.mxu2 %v2308_v31 }
  0x43   : > { %v804_v19 = vunpack.c.l.b16 %v731_v8  ;;  %1662 = vmatpush.bf16.msrb.mxu3 %v2316_v12  ;;  %v758_v2 = vrot.slane %v756_v62, 1  ;;  %v779_v8 = vshll.u32 %v2675_v15, 16 }
  0x45   : > { %1489 = vmatpush.bf16.msrb.mxu1 %v2267_v20  ;;  %1576 = vmatpush.bf16.msrb.mxu0 %v2291_v14  ;;  %v738_v20 = vor.u32 %v737_v11, %v733_v10  ;;  %v983_v14 = vpack.c.b16 %v812_v46, %v809_v60  ;;  %v975_v25 = vpack.c.b16 %v804_v19, %v801_v51  ;;  %v2878_v60 = vunpack.c.l.b16 %v775_v23 }
  0x46   : > { %1634 = vmatpush.bf16.msrb.mxu2 %v2307_v58  ;;  %v740_v46 = vshrl.u32 %v2631_v53, 16  ;;  %v989_v58 = vpack.c.b16 %v818_v50, %v815_v47  ;;  %v777_v10 = vshrl.u32 %v2675_v15, 16  ;;  %v781_v11 = vrot.slane %v779_v8, 1 }
  0x47   : > { %1663 = vmatpush.bf16.msrb.mxu3 %v2315_v52  ;;  %v992_v15 = vpack.c.b16 %v794_v9, %v818_v50 }
  0x48   : > { %1554 = vmatmul.bf16.gmra.mxu3 %v977_v42  ;;  %v749_v42 = vshll.u32 %v2709_v38, 16  ;;  %v2323_v38 = vld [vmem:[%s3001_s5 + $0x208] sm:$0xff] }
  0x49   : > { %1490 = vmatpush.bf16.msrb.mxu1 %v2266_v26  ;;  %1577 = vmatpush.bf16.msrb.mxu0 %v2290_v30  ;;  %v742_v26 = vshll.u32 %v2631_v53, 16  ;;  %v2876_v30 = vunpack.c.l.b16 %v774_v56 }
  0x4a   : > { %1635 = vmatpush.bf16.msrb.mxu2 %v2306_v3  ;;  %v2322_v3 = vld [vmem:[%s3001_s5 + $0x200] sm:$0xff] }
  0x4b   : > { %v744_v31 = vrot.slane %v742_v26, 1  ;;  %1664 = vmatpush.bf16.msrb.mxu3 %v2314_v40  ;;  %v2893_v53 = vpack.c.b16 %v2878_v60, %v2876_v30 }
  0x4c   : > { %1491 = vmatmul.bf16.vlgmr.msrb.gmra.mxu1 %v969_v49  ;;  %v2298_v49 = vld [vmem:[%s3001_s5 + $0x140] sm:$0xff] }
  0x4d   : > { %1599 = vmatpush.bf16.msra.mxu1 %v2305_v29  ;;  %1686 = vmatpush.bf16.msra.mxu0 %v2329_v35  ;;  %v807_v29 = vunpack.c.l.b16 %v738_v20  ;;  %v745_v43 = vor.u32 %v744_v31, %v740_v46 }
  0x4e   : > { %1578 = vmatmul.bf16.vlgmr.msrb.gmra.mxu0 %v972_v0  ;;  %2380 = vmatpush.bf16.msra.mxu2 %v2329_v35  ;;  %v2325_v35 = vld [vmem:[%s3001_s5 + $0x218] sm:$0xff]  ;;  %v754_v0 = vshrl.u32 %v2713_v39, 16  ;;  %v979_v39 = vpack.c.b16 %v2827_v54, %v2765_v7  ;;  %v985_v7 = vpack.c.b16 %v2876_v30, %v2829_v32 }
  0x4f   : > { %v978_v41 = vpack.c.b16 %v807_v29, %v804_v19  ;;  %v810_v51 = vunpack.c.l.b16 %v745_v43 }
  0x50   : > { %1530 = vmatmul.bf16.gmra.mxu2 %v2847_v4  ;;  %v759_v47 = vor.u32 %v758_v2, %v754_v0 }
  0x51   : > { %1600 = vmatpush.bf16.msra.mxu1 %v2304_v48  ;;  %1687 = vmatpush.bf16.msra.mxu0 %v2328_v59  ;;  %v751_v48 = vrot.slane %v749_v42, 1  ;;  %v981_v61 = vpack.c.b16 %v810_v51, %v807_v29 }
  0x52   : > { %2381 = vmatpush.bf16.msra.mxu2 %v2328_v59  ;;  %v2324_v59 = vld [vmem:[%s3001_s5 + $0x210] sm:$0xff]  ;;  %v816_v12 = vunpack.c.l.b16 %v759_v47 }
  0x55   : > { %1601 = vmatpush.bf16.msra.mxu1 %v2303_v57  ;;  %1688 = vmatpush.bf16.msra.mxu0 %v2327_v63  ;;  %v752_v57 = vor.u32 %v751_v48, %v747_v44 }
  0x56   : > { %2382 = vmatpush.bf16.msra.mxu2 %v2327_v63 }
  0x57   : > { %v813_v63 = vunpack.c.l.b16 %v752_v57 }
  0x58   : > { %1559 = vmatmul.bf16.gmra.mxu3 %v983_v14 }
  0x59   : > { %1602 = vmatpush.bf16.msra.mxu1 %v2302_v55  ;;  %1689 = vmatpush.bf16.msra.mxu0 %v2326_v17  ;;  %v984_v55 = vpack.c.b16 %v813_v63, %v810_v51 }
  0x5a   : > { %2383 = vmatpush.bf16.msra.mxu2 %v2326_v17  ;;  %v987_v17 = vpack.c.b16 %v816_v12, %v813_v63 }
  0x5c   : > { %1496 = vmatmul.bf16.gmra.mxu1 %v975_v25 }
  0x5d   : > { %1603 = vmatpush.bf16.msra.mxu1 %v2301_v13  ;;  %1690 = vmatpush.bf16.msra.mxu0 %v2325_v35  ;;  %v782_v13 = vor.u32 %v781_v11, %v777_v10 }
  0x5e   : > { %1583 = vmatmul.bf16.gmra.mxu0 %v978_v41  ;;  %2384 = vmatpush.bf16.msra.mxu2 %v2325_v35 }
  0x5f   : > { %v819_v19 = vunpack.c.l.b16 %v782_v13 }
  0x60   : > { %1535 = vmatmul.bf16.gmra.mxu2 %v2893_v53 }
  0x61   : > { %1604 = vmatpush.bf16.msra.mxu1 %v2300_v24  ;;  %1691 = vmatpush.bf16.msra.mxu0 %v2324_v59  ;;  %v990_v52 = vpack.c.b16 %v819_v19, %v816_v12 }
  0x62   : > { %2385 = vmatpush.bf16.msra.mxu2 %v2324_v59 }
  0x65   : > { %1605 = vmatpush.bf16.msra.mxu1 %v2299_v34  ;;  %1692 = vmatpush.bf16.msra.mxu0 %v2323_v38 }
  0x66   : > { %2386 = vmatpush.bf16.msra.mxu2 %v2323_v38 }
  0x68   : > { %1564 = vmatmul.bf16.gmra.mxu3 %v989_v58 }
  0x69   : > { %1606 = vmatpush.bf16.msra.mxu1 %v2298_v49  ;;  %1693 = vmatpush.bf16.msra.mxu0 %v2322_v3 }
  0x6a   : > { %2387 = vmatpush.bf16.msra.mxu2 %v2322_v3 }
  0x6c   : > { %1501 = vmatmul.bf16.gmra.mxu1 %v981_v61 }
  0x6e   : > { %1588 = vmatmul.bf16.gmra.mxu0 %v984_v55 }
  0x70   : > { %1636 = vmatmul.bf16.vlgmr.msrb.gmra.mxu2 %v2776_v18 }
  0x78   : > { %1665 = vmatmul.bf16.vlgmr.msrb.gmra.mxu3 %v975_v25 }
  0x7c   : > { %1506 = vmatmul.bf16.gmra.mxu1 %v987_v17 }
  0x7e   : > { %1593 = vmatmul.bf16.gmra.mxu0 %v990_v52 }
  0x80   : > { %1641 = vmatmul.bf16.gmra.mxu2 %v2652_v5  ;;  %v993_v5 = vpack.c.b16 %v795_v33, %v819_v19 }
  0x88   : > { %1670 = vmatmul.bf16.gmra.mxu3 %v981_v61 }
  0x8c   : > { %1607 = vmatmul.bf16.vlgmr.msra.gmra.mxu1 %v973_v6 }
  0x8e   : > { %1694 = vmatmul.bf16.vlgmr.msra.gmra.mxu0 %v2783_v21 }
  0x90   : > { %1646 = vmatmul.bf16.gmra.mxu2 %v2754_v36  ;;  %v991_v36 = vpack.c.b16 %v2695_v28, %v2878_v60 }
  0x98   : > { %1675 = vmatmul.bf16.gmra.mxu3 %v987_v17 }
  0x9c   : > { %1612 = vmatmul.bf16.gmra.mxu1 %v979_v39 }
  0x9e   : > { %1699 = vmatmul.bf16.gmra.mxu0 %v2847_v4 }
  0xa0   : > { %1651 = vmatmul.bf16.gmra.mxu2 %v992_v15 }
  0xa8   : > { %1680 = vmatmul.bf16.gmra.mxu3 %v993_v5 }
  0xa9   : > { %v1473_v27 = vpop.f32.mrf.mxu1 }
  0xab   : > { %v1463_v1 = vpop.f32.mrf.mxu0 }
  0xac   : > { %1617 = vmatmul.bf16.gmra.mxu1 %v985_v7 }
  0xae   : > { %1704 = vmatmul.bf16.gmra.mxu0 %v2893_v53 }
  0xb0   : > { %1709 = vmatmul.bf16.vlgmr.msra.gmra.mxu2 %v994_v37 }
  0xb1   : > { %v1475_v6 = vpop.f32.mrf.mxu1 }
  0xb3   : > { %v1465_v45 = vpop.f32.mrf.mxu0  ;;  %v1521_v9 = vpop.f32.mrf.mxu2 }
  0xb9   : > { %v1478_v18 = vpop.f32.mrf.mxu1 }
  0xbb   : > { %v1550_v21 = vpop.f32.mrf.mxu3  ;;  %v1468_v22 = vpop.f32.mrf.mxu0 }
  0xbc   : > { %1622 = vmatmul.bf16.gmra.mxu1 %v991_v36  ;;  %v1523_v33 = vpop.f32.mrf.mxu2 }
  0xc1   : > { %v1480_v54 = vpop.f32.mrf.mxu1 }
  0xc3   : > { %v1552_v32 = vpop.f32.mrf.mxu3  ;;  %v1470_v4 = vpop.f32.mrf.mxu0 }
  0xc4   : > { %v1526_v20 = vpop.f32.mrf.mxu2 }
  0xc9   : > { %v1492_v14 = vpop.f32.mrf.mxu1 }
  0xca   : > { %v1493_v56 = vadd.f32 %v1492_v14, %v1463_v1 }
  0xcb   : > { %v1555_v24 = vpop.f32.mrf.mxu3  ;;  %v1579_v25 = vpop.f32.mrf.mxu0 }
  0xcc   : > { %v1522_v23 = vadd.f32 %v1521_v9, %v1493_v56  ;;  %v1528_v16 = vpop.f32.mrf.mxu2 }
  0xce   : > { %v1551_v37 = vadd.f32 %v1550_v21, %v1522_v23 }
  0xd0   : > { %v1580_v26 = vadd.f32 %v1579_v25, %v1551_v37 }
  0xd1   : > { %v1494_v29 = vpop.f32.mrf.mxu1 }
  0xd2   : > { %v1495_v30 = vadd.f32 %v1494_v29, %v1465_v45 }
  0xd3   : > { %v2938_v60 = vpop.f32.mrf.mxu3  ;;  %v1581_v31 = vpop.f32.mrf.mxu0 }
  0xd4   : > { %v1524_v28 = vadd.f32 %v1523_v33, %v1495_v30  ;;  %v1531_v46 = vpop.f32.mrf.mxu2 }
  0xd6   : > { %v1553_v21 = vadd.f32 %v1552_v32, %v1524_v28 }
  0xd9   : > { %v1497_v34 = vpop.f32.mrf.mxu1 }
  0xda   : > { %v1498_v35 = vadd.f32 %v1497_v34, %v1468_v22 }
  0xdb   : > { %v1560_v41 = vpop.f32.mrf.mxu3  ;;  %v1584_v43 = vpop.f32.mrf.mxu0 }
  0xdc   : > { %v1527_v40 = vadd.f32 %v1526_v20, %v1498_v35  ;;  %v1533_v42 = vpop.f32.mrf.mxu2 }
  0xde   : > { %v1556_v53 = vadd.f32 %v1555_v24, %v1527_v40 }
  0xe0   : > { %v1585_v44 = vadd.f32 %v1584_v43, %v1556_v53 }
  0xe1   : > { %v1499_v48 = vpop.f32.mrf.mxu1 }
  0xe2   : > { %v1500_v49 = vadd.f32 %v1499_v48, %v1470_v4  ;;  %v1582_v4 = vadd.f32 %v1581_v31, %v1553_v21 }
  0xe3   : > { %v2940_v59 = vpop.f32.mrf.mxu3  ;;  %v1586_v57 = vpop.f32.mrf.mxu0 }
  0xe4   : > { %v1529_v50 = vadd.f32 %v1528_v16, %v1500_v49  ;;  %v1536_v51 = vpop.f32.mrf.mxu2 }
  0xe6   : > { %v1558_v34 = vadd.f32 %v2938_v60, %v1529_v50 }
  0xe8   : > { %v1587_v48 = vadd.f32 %v1586_v57, %v1558_v34 }
  0xe9   : > { %v1502_v38 = vpop.f32.mrf.mxu1 }
  0xea   : > { %v1503_v58 = vadd.f32 %v1502_v38, %v1473_v27 }
  0xeb   : > { %v2942_v62 = vpop.f32.mrf.mxu3  ;;  %v1589_v2 = vpop.f32.mrf.mxu0 }
  0xec   : > { %v1532_v61 = vadd.f32 %v1531_v46, %v1503_v58  ;;  %v1538_v63 = vpop.f32.mrf.mxu2 }
  0xee   : > { %v1561_v0 = vadd.f32 %v1560_v41, %v1532_v61 }
  0xf0   : > { %v2944_v3 = vadd.f32 %v1589_v2, %v1561_v0 }
  0xf1   : > { %v1504_v55 = vpop.f32.mrf.mxu1 }
  0xf2   : > { %v1505_v8 = vadd.f32 %v1504_v55, %v1475_v6 }
  0xf3   : > { %v2948_v10 = vpop.f32.mrf.mxu3  ;;  %v2950_v11 = vpop.f32.mrf.mxu0 }
  0xf4   : > { %v2946_v47 = vadd.f32 %v1533_v42, %v1505_v8  ;;  %v1637_v39 = vpop.f32.mrf.mxu2 }
  0xf6   : > { %v1563_v57 = vadd.f32 %v2940_v59, %v2946_v47 }
  0xf9   : > { %v1507_v12 = vpop.f32.mrf.mxu1 }
  0xfa   : > { %v1508_v13 = vadd.f32 %v1507_v12, %v1478_v18 }
  0xfb   : > { %v2954_v19 = vpop.f32.mrf.mxu0  ;;  %v1666_v15 = vpop.f32.mrf.mxu3 }
  0xfc   : > { %v2952_v17 = vadd.f32 %v1536_v51, %v1508_v13  ;;  %v1639_v52 = vpop.f32.mrf.mxu2 }
 0x101   : > { %v1509_v5 = vpop.f32.mrf.mxu1 }
 0x102   : > { %v1510_v7 = vadd.f32 %v1509_v5, %v1480_v54 }
 0x103   : > { %v2958_v1 = vpop.f32.mrf.mxu0  ;;  %v1668_v9 = vpop.f32.mrf.mxu3 }
 0x104   : > { %v2956_v27 = vadd.f32 %v1538_v63, %v1510_v7  ;;  %v1642_v6 = vpop.f32.mrf.mxu2 }
 0x109   : > { %v1608_v45 = vpop.f32.mrf.mxu1 }
 0x10a   : > { %v1609_v36 = vadd.f32 %v1608_v45, %v1580_v26  ;;  %v1592_v45 = vadd.f32 %v2950_v11, %v1563_v57 }
 0x10b   : > { %v1695_v33 = vpop.f32.mrf.mxu0  ;;  %v1671_v23 = vpop.f32.mrf.mxu3 }
 0x10c   : > { %v1638_v22 = vadd.f32 %v1637_v39, %v1609_v36  ;;  %v1644_v18 = vpop.f32.mrf.mxu2 }
 0x10e   : > { %v1667_v20 = vadd.f32 %v1666_v15, %v1638_v22 }
 0x110   : > { %v1696_v54 = vadd.f32 %v1695_v33, %v1667_v20 }
 0x111   : > { %v1610_v14 = vpop.f32.mrf.mxu1 }
 0x112   : > { %v1611_v56 = vadd.f32 %v1610_v14, %v1582_v4  ;;  %v1728_v30 = vmul.f32 %v1696_v54, %v1696_v54 }
 0x113   : > { %v1697_v25 = vpop.f32.mrf.mxu0  ;;  %v1673_v41 = vpop.f32.mrf.mxu3 }
 0x114   : > { %v1640_v24 = vadd.f32 %v1639_v52, %v1611_v56  ;;  %v1647_v16 = vpop.f32.mrf.mxu2 }
 0x116   : > { %v1669_v37 = vadd.f32 %v1668_v9, %v1640_v24 }
 0x118   : > { %v1698_v29 = vadd.f32 %v1697_v25, %v1669_v37 }
 0x119   : > { %v1613_v32 = vpop.f32.mrf.mxu1 }
 0x11a   : > { %v1715_v26 = vadd.f32 %v1698_v29, %v1696_v54  ;;  %v1729_v28 = vmul.f32 %v1698_v29, %v1698_v29  ;;  %v2349_v46 = vpack.c.bf16 %v1698_v29, %v1696_v54  ;;  %v1614_v31 = vadd.f32 %v1613_v32, %v1585_v44 }
 0x11b   : > { %v1700_v53 = vpop.f32.mrf.mxu0  ;;  %v1676_v55 = vpop.f32.mrf.mxu3  ;;  %v1568_v29 = vadd.f32 %v2948_v10, %v2956_v27 }
 0x11c   : > { %v1736_v35 = vadd.f32 %v1729_v28, %v1728_v30  ;;  %2350 = vst [vmem:[%s2965_s17] sm:$0xff] %v2349_v46   ;;  %v1643_v40 = vadd.f32 %v1642_v6, %v1614_v31  ;;  %v1649_v43 = vpop.f32.mrf.mxu2 }
 0x11e   : > { %v1672_v42 = vadd.f32 %v1671_v23, %v1643_v40 }
 0x120   : > { %v1701_v49 = vadd.f32 %v1700_v53, %v1672_v42 }
 0x121   : > { %v1615_v51 = vpop.f32.mrf.mxu1 }
 0x122   : > { %v1716_v38 = vadd.f32 %v1715_v26, %v1701_v49  ;;  %v1730_v58 = vmul.f32 %v1701_v49, %v1701_v49  ;;  %v1616_v61 = vadd.f32 %v1615_v51, %v1587_v48  ;;  %v1597_v26 = vadd.f32 %v2958_v1, %v1568_v29 }
 0x123   : > { %v1702_v44 = vpop.f32.mrf.mxu0  ;;  %v1678_v36 = vpop.f32.mrf.mxu3 }
 0x124   : > { %v1737_v63 = vadd.f32 %v1736_v35, %v1730_v58  ;;  %v1645_v0 = vadd.f32 %v1644_v18, %v1616_v61  ;;  %v1652_v50 = vpop.f32.mrf.mxu2 }
 0x126   : > { %v1674_v2 = vadd.f32 %v1673_v41, %v1645_v0 }
 0x128   : > { %v1703_v60 = vadd.f32 %v1702_v44, %v1674_v2 }
 0x129   : > { %v1618_v8 = vpop.f32.mrf.mxu1 }
 0x12a   : > { %v1717_v39 = vadd.f32 %v1716_v38, %v1703_v60  ;;  %v1731_v12 = vmul.f32 %v1703_v60, %v1703_v60  ;;  %v2354_v13 = vpack.c.bf16 %v1703_v60, %v1701_v49  ;;  %v1619_v52 = vadd.f32 %v1618_v8, %v2944_v3 }
 0x12b   : > { %v1705_v6 = vpop.f32.mrf.mxu0  ;;  %v1566_v3 = vadd.f32 %v2942_v62, %v2952_v17  ;;  %v1681_v25 = vpop.f32.mrf.mxu3 }
 0x12c   : > { %v1738_v15 = vadd.f32 %v1737_v63, %v1731_v12  ;;  %2369 = vst [vmem:[%s2965_s17 + $0x8] sm:$0xff] %v2354_v13   ;;  %v1648_v5 = vadd.f32 %v1647_v16, %v1619_v52  ;;  %v1654_v4 = vpop.f32.mrf.mxu2 }
 0x12d   : > { %v1595_v56 = vadd.f32 %v2954_v19, %v1566_v3 }
 0x12e   : > { %v1677_v7 = vadd.f32 %v1676_v55, %v1648_v5 }
 0x130   : > { %v1706_v9 = vadd.f32 %v1705_v6, %v1677_v7 }
 0x131   : > { %v1620_v21 = vpop.f32.mrf.mxu1 }
 0x132   : > { %v1718_v22 = vadd.f32 %v1717_v39, %v1706_v9  ;;  %v1732_v18 = vmul.f32 %v1706_v9, %v1706_v9  ;;  %v1621_v33 = vadd.f32 %v1620_v21, %v1592_v45 }
 0x133   : > { %v1707_v14 = vpop.f32.mrf.mxu0  ;;  %v1683_v41 = vpop.f32.mrf.mxu3 }
 0x134   : > { %v1739_v20 = vadd.f32 %v1738_v15, %v1732_v18  ;;  %v1650_v59 = vadd.f32 %v1649_v43, %v1621_v33  ;;  %v1710_v62 = vpop.f32.mrf.mxu2 }
 0x136   : > { %v1679_v47 = vadd.f32 %v1678_v36, %v1650_v59 }
 0x138   : > { %v1708_v23 = vadd.f32 %v1707_v14, %v1679_v47 }
 0x139   : > { %v1623_v24 = vpop.f32.mrf.mxu1 }
 0x13a   : > { %v1719_v11 = vadd.f32 %v1718_v22, %v1708_v23  ;;  %v1733_v54 = vmul.f32 %v1708_v23, %v1708_v23  ;;  %v2359_v16 = vpack.c.bf16 %v1708_v23, %v1706_v9  ;;  %v1624_v37 = vadd.f32 %v1623_v24, %v1595_v56 }
 0x13c   : > { %v1740_v30 = vadd.f32 %v1739_v20, %v1733_v54  ;;  %2370 = vst [vmem:[%s2965_s17 + $0x10] sm:$0xff] %v2359_v16   ;;  %v1653_v32 = vadd.f32 %v1652_v50, %v1624_v37  ;;  %v1712_v53 = vpop.f32.mrf.mxu2 }
 0x13e   : > { %v1682_v17 = vadd.f32 %v1681_v25, %v1653_v32 }
 0x140   : > { %v1711_v28 = vadd.f32 %v1710_v62, %v1682_v17 }
 0x141   : > { %v1625_v19 = vpop.f32.mrf.mxu1 }
 0x142   : > { %v1720_v46 = vadd.f32 %v1719_v11, %v1711_v28  ;;  %v1734_v31 = vmul.f32 %v1711_v28, %v1711_v28  ;;  %v1626_v34 = vadd.f32 %v1625_v19, %v1597_v26 }
 0x144   : > { %v1741_v35 = vadd.f32 %v1740_v30, %v1734_v31  ;;  %v1655_v40 = vadd.f32 %v1654_v4, %v1626_v34 }
 0x146   : > { %v1684_v42 = vadd.f32 %v1683_v41, %v1655_v40 }
 0x148   : > { %v1713_v10 = vadd.f32 %v1712_v53, %v1684_v42 }
 0x14a   : > { %v1721_v27 = vadd.f32 %v1720_v46, %v1713_v10  ;;  %v1735_v43 = vmul.f32 %v1713_v10, %v1713_v10  ;;  %v2364_v48 = vpack.c.bf16 %v1713_v10, %v1711_v28 }
 0x14c   : > { %v1722_v49 = vrot.slane %v1721_v27, 4  ;;  %v1742_v51 = vadd.f32 %v1741_v35, %v1735_v43  ;;  %2371 = vst [vmem:[%s2965_s17 + $0x18] sm:$0xff] %v2364_v48  }
 0x14e   : > { %v1723_v1 = vadd.f32 %v1722_v49, %v1721_v27  ;;  %v1743_v38 = vrot.slane %v1742_v51, 4 }
 0x150   : > { %v1724_v58 = vrot.slane %v1723_v1, 2  ;;  %v1744_v61 = vadd.f32 %v1743_v38, %v1742_v51 }
 0x152   : > { %v1725_v63 = vadd.f32 %v1724_v58, %v1723_v1  ;;  %v1745_v0 = vrot.slane %v1744_v61, 2 }
 0x154   : > { %v1726_v2 = vrot.slane %v1725_v63, 1  ;;  %v1746_v44 = vadd.f32 %v1745_v0, %v1744_v61 }
 0x156   : > { %v1747_v55 = vrot.slane %v1746_v44, 1  ;;  %v1727_v60 = vadd.f32 %v1726_v2, %v1725_v63 }
 0x158   : > { %v1748_v50 = vadd.f32 %v1747_v55, %v1746_v44 }
 0x15a   : > { %v1750_v8 = vsel %vm678_vm0, %v1727_v60, %v1748_v50 }
 0x15b   : > { %1755 = vst [vmem:[%s487_s20] sm:$0x3] %v1750_v8 }
 0x15c PF: > { %s18_s2 = sadd.s32 1, %s2437_s2   ;;  %s3008_s24 = smov %s2433_s1 }
 0x15d   : > { %p15_p5 = scmp.ge.s32.totalorder %s18_s2, 4   ;;  %s3009_s1 = smov %s3011_s25 }
 0x15f   :  { %17 = sbr.rel (!%p15_p5) target bundleno = 2 (0x2), region = 100 }

</bundles_post_ra>
